<compile_context>
chip_gen: v7x
topology: tpu7x:2x2x1
jax: 0.10.0
libtpu: 0.0.40
codegen_flags: <defaults>
</compile_context>

<pallas_src>
import functools

import jax
import jax.numpy as jnp
from jax.experimental import pallas as pl
from jax.experimental.pallas import tpu as pltpu


# Transposed-conv taps per output parity (py, px):
#   list of ((row_off, col_off) into the input, (ky, kx) into the ConvTranspose2d
#   kernel), derived from  oy = 2*iy - 1 + ky,  ox = 2*ix - 1 + kx.
_DECONV_TAPS = {
    (0, 0): (((0, 0), (1, 1)),),
    (0, 1): (((0, 0), (1, 2)), ((0, 1), (1, 0))),
    (1, 0): (((0, 0), (2, 1)), ((1, 0), (0, 1))),
    (1, 1): (((0, 0), (2, 2)), ((0, 1), (2, 0)),
             ((1, 0), (0, 2)), ((1, 1), (0, 0))),
}

_PARITIES = ((0, 0), (0, 1), (1, 0), (1, 1))


def _upsample_kernel(x_ref, wd_ref, bd_ref, wc_ref, bc_ref, o_ref,
                     xpad_ref, t_ref, *, H, W, Ho, Wo):
    """One batch item: subpixel deconv+ReLU -> VMEM scratch -> 3x3 conv+ReLU.

    x_ref   : (1, H, W, C)          input, f32
    wd_ref  : (3, 3, C, C)          deconv taps (ky, kx, Cin, Cout), bf16
    bd_ref  : (1, C)                deconv bias, f32
    wc_ref  : (3, 3, C, C)          conv taps   (ky, kx, Cin, Cout), bf16
    bc_ref  : (1, C)                conv bias, f32
    o_ref   : (1, 2, 2, H*W, C)     output phases: out[2i+py, 2j+px] = o[0,py,px,i*W+j]
    xpad_ref: (H+1, W+1, C)         f32 scratch: input with far-side zero halo
    t_ref   : (2, 2, H+2, W+2, C)   f32 scratch: zero-padded deconv phases
    """
    C = x_ref.shape[-1]
    M = H * W
    cdt = wd_ref.dtype  # bf16 compute dtype for the MXU

    # ---- in-kernel far-side zero halo (replaces a jnp.pad HBM pass) -----------
    xpad_ref[...] = jnp.zeros(xpad_ref.shape, xpad_ref.dtype)
    xpad_ref[0:H, 0:W, :] = x_ref[0]

    # ---- stage 1: subpixel transposed conv + bias + ReLU -> VMEM scratch ------
    bd = bd_ref[...]
    t_ref[...] = jnp.zeros(t_ref.shape, t_ref.dtype)   # halo = conv zero padding
    for py, px in _PARITIES:
        acc = jnp.zeros((M, C), jnp.float32)
        for (oy, ox), (ky, kx) in _DECONV_TAPS[(py, px)]:
            lhs = xpad_ref[oy:oy + H, ox:ox + W, :].reshape(M, C).astype(cdt)
            acc += jnp.dot(lhs, wd_ref[ky, kx],
                           preferred_element_type=jnp.float32)
        ph = jnp.maximum(acc + bd, 0.0).reshape(H, W, C)
        nr = (Ho - py + 1) // 2   # rows of this parity that exist in output_size
        nc = (Wo - px + 1) // 2
        t_ref[py, px, 1:1 + nr, 1:1 + nc, :] = ph[:nr, :nc, :]

    # ---- stage 2: 3x3 conv (stride 1, pad 1) on the interleaved grid ----------
    # The 4 output parities share each conv tap, so batch them along M:
    # 9 matmuls of (4M, C) x (C, C) instead of 36 of (M, C) x (C, C).
    bc = bc_ref[...]
    acc = jnp.zeros((4 * M, C), jnp.float32)
    for dy in (-1, 0, 1):
        for dx in (-1, 0, 1):
            wins = []
            for py, px in _PARITIES:
                qy, sy = (py + dy) % 2, (py + dy) // 2
                qx, sx = (px + dx) % 2, (px + dx) // 2
                win = t_ref[qy, qx, 1 + sy:1 + sy + H, 1 + sx:1 + sx + W, :]
                wins.append(win.reshape(M, C).astype(cdt))
            lhs = jnp.concatenate(wins, axis=0)         # sublane-aligned concat
            acc += jnp.dot(lhs, wc_ref[dy + 1, dx + 1],
                           preferred_element_type=jnp.float32)
    out = jnp.maximum(acc + bc, 0.0)
    o_ref[0] = out.reshape(2, 2, M, C).astype(o_ref.dtype)   # free reshape (M%8==0)


def upsample_forward(x_nchw, params, output_size):
    """Matches UpSample.forward(x, output_size). x is NCHW (PyTorch convention)."""
    N, C, H, W = x_nchw.shape
    Ho, Wo = output_size
    assert Ho in (2 * H - 1, 2 * H) and Wo in (2 * W - 1, 2 * W), \
        "output_size must satisfy output_padding < stride for k=3, s=2, p=1"

    # PyTorch weight layouts -> per-tap (ky, kx, Cin, Cout) matrices, bf16 for MXU.
    #   ConvTranspose2d weight: (Cin, Cout, kh, kw);  Conv2d weight: (Cout, Cin, kh, kw)
    wd = jnp.transpose(params['deconv_w'], (2, 3, 0, 1)).astype(jnp.bfloat16)
    wc = jnp.transpose(params['conv_w'], (2, 3, 1, 0)).astype(jnp.bfloat16)
    bd = params['deconv_b'].reshape(1, C).astype(jnp.float32)
    bc = params['conv_b'].reshape(1, C).astype(jnp.float32)

    x = jnp.transpose(x_nchw, (0, 2, 3, 1))              # NCHW -> NHWC (C = lanes)

    M = H * W
    kern = functools.partial(_upsample_kernel, H=H, W=W, Ho=Ho, Wo=Wo)
    flops = 2 * N * M * C * C * 45                       # 9 + 9*4 (M-batched) matmuls
    bytes_accessed = (x.size * 4 + wd.size * 2 + wc.size * 2 +
                      bd.size * 4 + bc.size * 4 + N * 4 * M * C * 4)

    phases = pl.pallas_call(
        kern,
        out_shape=jax.ShapeDtypeStruct((N, 2, 2, M, C), jnp.float32),
        grid_spec=pltpu.PrefetchScalarGridSpec(
            num_scalar_prefetch=0,
            grid=(N,),
            in_specs=[
                pl.BlockSpec((1, H, W, C), lambda n: (n, 0, 0, 0)),
                pl.BlockSpec((3, 3, C, C), lambda n: (0, 0, 0, 0)),
                pl.BlockSpec((1, C), lambda n: (0, 0)),
                pl.BlockSpec((3, 3, C, C), lambda n: (0, 0, 0, 0)),
                pl.BlockSpec((1, C), lambda n: (0, 0)),
            ],
            out_specs=pl.BlockSpec((1, 2, 2, M, C),
                                   lambda n: (n, 0, 0, 0, 0)),
            scratch_shapes=[
                pltpu.VMEM((H + 1, W + 1, C), jnp.float32),
                pltpu.VMEM((2, 2, H + 2, W + 2, C), jnp.float32),
            ],
        ),
        compiler_params=pltpu.CompilerParams(dimension_semantics=("parallel",)),
        cost_estimate=pl.CostEstimate(flops=flops, transcendentals=0,
                                      bytes_accessed=bytes_accessed),
    )(x, wd, bd, wc, bc)

    # Interleave the four output phases (single fused XLA copy with the crop +
    # NCHW transpose): out[n, 2i+py, 2j+px, c] = phases[n, py, px, i*W+j, c]
    full = jnp.transpose(phases.reshape(N, 2, 2, H, W, C),
                         (0, 3, 1, 4, 2, 5)).reshape(N, 2 * H, 2 * W, C)
    out = full[:, :Ho, :Wo, :]
    return jnp.transpose(out, (0, 3, 1, 2))              # NHWC -> NCHW


# ----------------------------------------------------------------------------
# Plain-XLA reference (f32) for a numerical sanity check
# ----------------------------------------------------------------------------
def upsample_reference(x, params, output_size):
    N, C, H, W = x.shape
    Ho, Wo = output_size
    op_h, op_w = Ho - (2 * H - 1), Wo - (2 * W - 1)
    w_flip = jnp.transpose(jnp.flip(params['deconv_w'], (2, 3)), (1, 0, 2, 3))
    t = jax.lax.conv_general_dilated(
        x, w_flip, window_strides=(1, 1),
        padding=((1, 1 + op_h), (1, 1 + op_w)), lhs_dilation=(2, 2),
        dimension_numbers=('NCHW', 'OIHW', 'NCHW'),
        precision=jax.lax.Precision.HIGHEST)
    t = jax.nn.relu(t + params['deconv_b'][None, :, None, None])
    o = jax.lax.conv_general_dilated(
        t, params['conv_w'], window_strides=(1, 1), padding=((1, 1), (1, 1)),
        dimension_numbers=('NCHW', 'OIHW', 'NCHW'),
        precision=jax.lax.Precision.HIGHEST)
    return jax.nn.relu(o + params['conv_b'][None, :, None, None])


if __name__ == "__main__":
    key = jax.random.PRNGKey(0)
    k_x, k_wd, k_bd, k_wc, k_bc = jax.random.split(key, 5)
    N, C, H, W = 2, 32, 8, 8

    x = jax.random.normal(k_x, (N, C, H, W), jnp.float32)
    params = {
        # PyTorch layouts: ConvTranspose2d (Cin,Cout,kh,kw); Conv2d (Cout,Cin,kh,kw)
        'deconv_w': 0.1 * jax.random.normal(k_wd, (C, C, 3, 3), jnp.float32),
        'deconv_b': 0.01 * jax.random.normal(k_bd, (C,), jnp.float32),
        'conv_w': 0.1 * jax.random.normal(k_wc, (C, C, 3, 3), jnp.float32),
        'conv_b': 0.01 * jax.random.normal(k_bc, (C,), jnp.float32),
    }

    fwd = jax.jit(upsample_forward, static_argnames=('output_size',))

    # even output size (output_padding = 1) and odd output size (output_padding = 0)
    for out_hw in ((2 * H, 2 * W), (2 * H - 1, 2 * W - 1)):
        out = jax.block_until_ready(fwd(x, params, output_size=out_hw))
        assert out.shape == (N, C, out_hw[0], out_hw[1]), out.shape
        assert bool(jnp.all(jnp.isfinite(out)))
        ref = upsample_reference(x, params, out_hw)
        err = float(jnp.max(jnp.abs(out - ref)))
        assert err < 0.2, f"max abs error vs XLA reference ({out_hw}): {err}"

    print("KERNEL_OK")
</pallas_src>

<mosaic_0001>
module attributes {stable_mosaic.version = 11 : i64} {
  func.func @_upsample_kernel(%arg0: i32, %arg1: memref<1x8x8x32xf32, #tpu.memory_space<vmem>>, %arg2: memref<3x3x32x32xbf16, #tpu.memory_space<vmem>>, %arg3: memref<1x32xf32, #tpu.memory_space<vmem>>, %arg4: memref<3x3x32x32xbf16, #tpu.memory_space<vmem>>, %arg5: memref<1x32xf32, #tpu.memory_space<vmem>>, %arg6: memref<1x2x2x64x32xf32, #tpu.memory_space<vmem>>, %arg7: memref<9x9x32xf32, #tpu.memory_space<vmem>>, %arg8: memref<2x2x10x10x32xf32, #tpu.memory_space<vmem>>) attributes {dimension_semantics = [#tpu.dimension_semantics<parallel>], iteration_bounds = array<i64: 2>, scalar_prefetch = 0 : i64, scratch_operands = 2 : i64, tpu.core_type = #tpu.core_type<tc>, window_params = [{transform_indices = @transform_0, window_bounds = array<i64: 1, 8, 8, 32>}, {pipeline_mode = #tpu.pipeline_mode<synchronous>, transform_indices = @transform_1, window_bounds = array<i64: 3, 3, 32, 32>}, {pipeline_mode = #tpu.pipeline_mode<synchronous>, transform_indices = @transform_2, window_bounds = array<i64: 1, 32>}, {pipeline_mode = #tpu.pipeline_mode<synchronous>, transform_indices = @transform_3, window_bounds = array<i64: 3, 3, 32, 32>}, {pipeline_mode = #tpu.pipeline_mode<synchronous>, transform_indices = @transform_4, window_bounds = array<i64: 1, 32>}, {transform_indices = @transform_5, window_bounds = array<i64: 1, 2, 2, 64, 32>}]} {
    %cst = arith.constant 0.000000e+00 : f32
    %0 = vector.broadcast %cst : f32 to vector<9x9x32xf32>
    %c0 = arith.constant 0 : index
    %c0_0 = arith.constant 0 : index
    %c0_1 = arith.constant 0 : index
    %1 = vector.load %arg7[%c0, %c0_0, %c0_1] : memref<9x9x32xf32, #tpu.memory_space<vmem>>, vector<9x9x32xf32>
    tpu.vector_store %arg7[%c0, %c0_0, %c0_1], %0 {strides = array<i32>} : memref<9x9x32xf32, #tpu.memory_space<vmem>>, vector<9x9x32xf32>,
    %c0_2 = arith.constant 0 : index
    %c0_3 = arith.constant 0 : index
    %c0_4 = arith.constant 0 : index
    %c0_5 = arith.constant 0 : index
    %2 = vector.load %arg1[%c0_2, %c0_3, %c0_4, %c0_5] : memref<1x8x8x32xf32, #tpu.memory_space<vmem>>, vector<1x8x8x32xf32>
    %3 = vector.shape_cast %2 : vector<1x8x8x32xf32> to vector<8x8x32xf32>
    %c0_6 = arith.constant 0 : index
    %c0_7 = arith.constant 0 : index
    %c0_8 = arith.constant 0 : index
    %4 = vector.load %arg7[%c0_6, %c0_7, %c0_8] : memref<9x9x32xf32, #tpu.memory_space<vmem>>, vector<8x8x32xf32>
    tpu.vector_store %arg7[%c0_6, %c0_7, %c0_8], %3 {strides = array<i32>} : memref<9x9x32xf32, #tpu.memory_space<vmem>>, vector<8x8x32xf32>,
    %c0_9 = arith.constant 0 : index
    %c0_10 = arith.constant 0 : index
    %5 = vector.load %arg3[%c0_9, %c0_10] : memref<1x32xf32, #tpu.memory_space<vmem>>, vector<1x32xf32>
    %cst_11 = arith.constant 0.000000e+00 : f32
    %6 = vector.broadcast %cst_11 : f32 to vector<2x2x10x10x32xf32>
    %c0_12 = arith.constant 0 : index
    %c0_13 = arith.constant 0 : index
    %c0_14 = arith.constant 0 : index
    %c0_15 = arith.constant 0 : index
    %c0_16 = arith.constant 0 : index
    %7 = vector.load %arg8[%c0_12, %c0_13, %c0_14, %c0_15, %c0_16] : memref<2x2x10x10x32xf32, #tpu.memory_space<vmem>>, vector<2x2x10x10x32xf32>
    tpu.vector_store %arg8[%c0_12, %c0_13, %c0_14, %c0_15, %c0_16], %6 {strides = array<i32>} : memref<2x2x10x10x32xf32, #tpu.memory_space<vmem>>, vector<2x2x10x10x32xf32>,
    %cst_17 = arith.constant 0.000000e+00 : f32
    %8 = vector.broadcast %cst_17 : f32 to vector<64x32xf32>
    %c0_18 = arith.constant 0 : index
    %c0_19 = arith.constant 0 : index
    %c0_20 = arith.constant 0 : index
    %9 = vector.load %arg7[%c0_18, %c0_19, %c0_20] : memref<9x9x32xf32, #tpu.memory_space<vmem>>, vector<8x8x32xf32>
    %10 = vector.shape_cast %9 : vector<8x8x32xf32> to vector<64x32xf32>
    %11 = arith.truncf %10 : vector<64x32xf32> to vector<64x32xbf16>
    %c1 = arith.constant 1 : index
    %c1_21 = arith.constant 1 : index
    %c0_22 = arith.constant 0 : index
    %c0_23 = arith.constant 0 : index
    %12 = vector.load %arg2[%c1, %c1_21, %c0_22, %c0_23] : memref<3x3x32x32xbf16, #tpu.memory_space<vmem>>, vector<1x1x32x32xbf16>
    %13 = vector.shape_cast %12 : vector<1x1x32x32xbf16> to vector<32x32xbf16>
    %cst_24 = arith.constant dense<0.000000e+00> : vector<64x32xf32>
    %14 = tpu.matmul %11, %13, %cst_24 {dimension_numbers = #tpu.dot_dimension_numbers<[1], [0], [0], [1], [0, 0, 1, 1], [], []>} : vector<64x32xbf16>, vector<32x32xbf16>, vector<64x32xf32> -> vector<64x32xf32>
    %15 = arith.addf %8, %14 : vector<64x32xf32>
    %16 = vector.broadcast %5 : vector<1x32xf32> to vector<64x32xf32>
    %17 = arith.addf %15, %16 : vector<64x32xf32>
    %cst_25 = arith.constant 0.000000e+00 : f32
    %18 = vector.broadcast %cst_25 : f32 to vector<64x32xf32>
    %19 = arith.maximumf %17, %18 : vector<64x32xf32>
    %20 = vector.shape_cast %19 : vector<64x32xf32> to vector<8x8x32xf32>
    %c0_26 = arith.constant 0 : index
    %c0_27 = arith.constant 0 : index
    %c1_28 = arith.constant 1 : index
    %c1_29 = arith.constant 1 : index
    %c0_30 = arith.constant 0 : index
    %21 = vector.load %arg8[%c0_26, %c0_27, %c1_28, %c1_29, %c0_30] : memref<2x2x10x10x32xf32, #tpu.memory_space<vmem>>, vector<1x1x8x8x32xf32>
    %22 = vector.shape_cast %21 : vector<1x1x8x8x32xf32> to vector<8x8x32xf32>
    %23 = vector.shape_cast %20 : vector<8x8x32xf32> to vector<1x1x8x8x32xf32>
    tpu.vector_store %arg8[%c0_26, %c0_27, %c1_28, %c1_29, %c0_30], %23 {strides = array<i32>} : memref<2x2x10x10x32xf32, #tpu.memory_space<vmem>>, vector<1x1x8x8x32xf32>,
    %cst_31 = arith.constant 0.000000e+00 : f32
    %24 = vector.broadcast %cst_31 : f32 to vector<64x32xf32>
    %c0_32 = arith.constant 0 : index
    %c0_33 = arith.constant 0 : index
    %c0_34 = arith.constant 0 : index
    %25 = vector.load %arg7[%c0_32, %c0_33, %c0_34] : memref<9x9x32xf32, #tpu.memory_space<vmem>>, vector<8x8x32xf32>
    %26 = vector.shape_cast %25 : vector<8x8x32xf32> to vector<64x32xf32>
    %27 = arith.truncf %26 : vector<64x32xf32> to vector<64x32xbf16>
    %c1_35 = arith.constant 1 : index
    %c2 = arith.constant 2 : index
    %c0_36 = arith.constant 0 : index
    %c0_37 = arith.constant 0 : index
    %28 = vector.load %arg2[%c1_35, %c2, %c0_36, %c0_37] : memref<3x3x32x32xbf16, #tpu.memory_space<vmem>>, vector<1x1x32x32xbf16>
    %29 = vector.shape_cast %28 : vector<1x1x32x32xbf16> to vector<32x32xbf16>
    %cst_38 = arith.constant dense<0.000000e+00> : vector<64x32xf32>
    %30 = tpu.matmul %27, %29, %cst_38 {dimension_numbers = #tpu.dot_dimension_numbers<[1], [0], [0], [1], [0, 0, 1, 1], [], []>} : vector<64x32xbf16>, vector<32x32xbf16>, vector<64x32xf32> -> vector<64x32xf32>
    %31 = arith.addf %24, %30 : vector<64x32xf32>
    %c0_39 = arith.constant 0 : index
    %c1_40 = arith.constant 1 : index
    %c0_41 = arith.constant 0 : index
    %32 = vector.load %arg7[%c0_39, %c1_40, %c0_41] : memref<9x9x32xf32, #tpu.memory_space<vmem>>, vector<8x8x32xf32>
    %33 = vector.shape_cast %32 : vector<8x8x32xf32> to vector<64x32xf32>
    %34 = arith.truncf %33 : vector<64x32xf32> to vector<64x32xbf16>
    %c1_42 = arith.constant 1 : index
    %c0_43 = arith.constant 0 : index
    %c0_44 = arith.constant 0 : index
    %c0_45 = arith.constant 0 : index
    %35 = vector.load %arg2[%c1_42, %c0_43, %c0_44, %c0_45] : memref<3x3x32x32xbf16, #tpu.memory_space<vmem>>, vector<1x1x32x32xbf16>
    %36 = vector.shape_cast %35 : vector<1x1x32x32xbf16> to vector<32x32xbf16>
    %cst_46 = arith.constant dense<0.000000e+00> : vector<64x32xf32>
    %37 = tpu.matmul %34, %36, %cst_46 {dimension_numbers = #tpu.dot_dimension_numbers<[1], [0], [0], [1], [0, 0, 1, 1], [], []>} : vector<64x32xbf16>, vector<32x32xbf16>, vector<64x32xf32> -> vector<64x32xf32>
    %38 = arith.addf %31, %37 : vector<64x32xf32>
    %39 = vector.broadcast %5 : vector<1x32xf32> to vector<64x32xf32>
    %40 = arith.addf %38, %39 : vector<64x32xf32>
    %cst_47 = arith.constant 0.000000e+00 : f32
    %41 = vector.broadcast %cst_47 : f32 to vector<64x32xf32>
    %42 = arith.maximumf %40, %41 : vector<64x32xf32>
    %43 = vector.shape_cast %42 : vector<64x32xf32> to vector<8x8x32xf32>
    %c0_48 = arith.constant 0 : index
    %c1_49 = arith.constant 1 : index
    %c1_50 = arith.constant 1 : index
    %c1_51 = arith.constant 1 : index
    %c0_52 = arith.constant 0 : index
    %44 = vector.load %arg8[%c0_48, %c1_49, %c1_50, %c1_51, %c0_52] : memref<2x2x10x10x32xf32, #tpu.memory_space<vmem>>, vector<1x1x8x8x32xf32>
    %45 = vector.shape_cast %44 : vector<1x1x8x8x32xf32> to vector<8x8x32xf32>
    %46 = vector.shape_cast %43 : vector<8x8x32xf32> to vector<1x1x8x8x32xf32>
    tpu.vector_store %arg8[%c0_48, %c1_49, %c1_50, %c1_51, %c0_52], %46 {strides = array<i32>} : memref<2x2x10x10x32xf32, #tpu.memory_space<vmem>>, vector<1x1x8x8x32xf32>,
    %cst_53 = arith.constant 0.000000e+00 : f32
    %47 = vector.broadcast %cst_53 : f32 to vector<64x32xf32>
    %c0_54 = arith.constant 0 : index
    %c0_55 = arith.constant 0 : index
    %c0_56 = arith.constant 0 : index
    %48 = vector.load %arg7[%c0_54, %c0_55, %c0_56] : memref<9x9x32xf32, #tpu.memory_space<vmem>>, vector<8x8x32xf32>
    %49 = vector.shape_cast %48 : vector<8x8x32xf32> to vector<64x32xf32>
    %50 = arith.truncf %49 : vector<64x32xf32> to vector<64x32xbf16>
    %c2_57 = arith.constant 2 : index
    %c1_58 = arith.constant 1 : index
    %c0_59 = arith.constant 0 : index
    %c0_60 = arith.constant 0 : index
    %51 = vector.load %arg2[%c2_57, %c1_58, %c0_59, %c0_60] : memref<3x3x32x32xbf16, #tpu.memory_space<vmem>>, vector<1x1x32x32xbf16>
    %52 = vector.shape_cast %51 : vector<1x1x32x32xbf16> to vector<32x32xbf16>
    %cst_61 = arith.constant dense<0.000000e+00> : vector<64x32xf32>
    %53 = tpu.matmul %50, %52, %cst_61 {dimension_numbers = #tpu.dot_dimension_numbers<[1], [0], [0], [1], [0, 0, 1, 1], [], []>} : vector<64x32xbf16>, vector<32x32xbf16>, vector<64x32xf32> -> vector<64x32xf32>
    %54 = arith.addf %47, %53 : vector<64x32xf32>
    %c1_62 = arith.constant 1 : index
    %c0_63 = arith.constant 0 : index
    %c0_64 = arith.constant 0 : index
    %55 = vector.load %arg7[%c1_62, %c0_63, %c0_64] : memref<9x9x32xf32, #tpu.memory_space<vmem>>, vector<8x8x32xf32>
    %56 = vector.shape_cast %55 : vector<8x8x32xf32> to vector<64x32xf32>
    %57 = arith.truncf %56 : vector<64x32xf32> to vector<64x32xbf16>
    %c0_65 = arith.constant 0 : index
    %c1_66 = arith.constant 1 : index
    %c0_67 = arith.constant 0 : index
    %c0_68 = arith.constant 0 : index
    %58 = vector.load %arg2[%c0_65, %c1_66, %c0_67, %c0_68] : memref<3x3x32x32xbf16, #tpu.memory_space<vmem>>, vector<1x1x32x32xbf16>
    %59 = vector.shape_cast %58 : vector<1x1x32x32xbf16> to vector<32x32xbf16>
    %cst_69 = arith.constant dense<0.000000e+00> : vector<64x32xf32>
    %60 = tpu.matmul %57, %59, %cst_69 {dimension_numbers = #tpu.dot_dimension_numbers<[1], [0], [0], [1], [0, 0, 1, 1], [], []>} : vector<64x32xbf16>, vector<32x32xbf16>, vector<64x32xf32> -> vector<64x32xf32>
    %61 = arith.addf %54, %60 : vector<64x32xf32>
    %62 = vector.broadcast %5 : vector<1x32xf32> to vector<64x32xf32>
    %63 = arith.addf %61, %62 : vector<64x32xf32>
    %cst_70 = arith.constant 0.000000e+00 : f32
    %64 = vector.broadcast %cst_70 : f32 to vector<64x32xf32>
    %65 = arith.maximumf %63, %64 : vector<64x32xf32>
    %66 = vector.shape_cast %65 : vector<64x32xf32> to vector<8x8x32xf32>
    %c1_71 = arith.constant 1 : index
    %c0_72 = arith.constant 0 : index
    %c1_73 = arith.constant 1 : index
    %c1_74 = arith.constant 1 : index
    %c0_75 = arith.constant 0 : index
    %67 = vector.load %arg8[%c1_71, %c0_72, %c1_73, %c1_74, %c0_75] : memref<2x2x10x10x32xf32, #tpu.memory_space<vmem>>, vector<1x1x8x8x32xf32>
    %68 = vector.shape_cast %67 : vector<1x1x8x8x32xf32> to vector<8x8x32xf32>
    %69 = vector.shape_cast %66 : vector<8x8x32xf32> to vector<1x1x8x8x32xf32>
    tpu.vector_store %arg8[%c1_71, %c0_72, %c1_73, %c1_74, %c0_75], %69 {strides = array<i32>} : memref<2x2x10x10x32xf32, #tpu.memory_space<vmem>>, vector<1x1x8x8x32xf32>,
    %cst_76 = arith.constant 0.000000e+00 : f32
    %70 = vector.broadcast %cst_76 : f32 to vector<64x32xf32>
    %c0_77 = arith.constant 0 : index
    %c0_78 = arith.constant 0 : index
    %c0_79 = arith.constant 0 : index
    %71 = vector.load %arg7[%c0_77, %c0_78, %c0_79] : memref<9x9x32xf32, #tpu.memory_space<vmem>>, vector<8x8x32xf32>
    %72 = vector.shape_cast %71 : vector<8x8x32xf32> to vector<64x32xf32>
    %73 = arith.truncf %72 : vector<64x32xf32> to vector<64x32xbf16>
    %c2_80 = arith.constant 2 : index
    %c2_81 = arith.constant 2 : index
    %c0_82 = arith.constant 0 : index
    %c0_83 = arith.constant 0 : index
    %74 = vector.load %arg2[%c2_80, %c2_81, %c0_82, %c0_83] : memref<3x3x32x32xbf16, #tpu.memory_space<vmem>>, vector<1x1x32x32xbf16>
    %75 = vector.shape_cast %74 : vector<1x1x32x32xbf16> to vector<32x32xbf16>
    %cst_84 = arith.constant dense<0.000000e+00> : vector<64x32xf32>
    %76 = tpu.matmul %73, %75, %cst_84 {dimension_numbers = #tpu.dot_dimension_numbers<[1], [0], [0], [1], [0, 0, 1, 1], [], []>} : vector<64x32xbf16>, vector<32x32xbf16>, vector<64x32xf32> -> vector<64x32xf32>
    %77 = arith.addf %70, %76 : vector<64x32xf32>
    %c0_85 = arith.constant 0 : index
    %c1_86 = arith.constant 1 : index
    %c0_87 = arith.constant 0 : index
    %78 = vector.load %arg7[%c0_85, %c1_86, %c0_87] : memref<9x9x32xf32, #tpu.memory_space<vmem>>, vector<8x8x32xf32>
    %79 = vector.shape_cast %78 : vector<8x8x32xf32> to vector<64x32xf32>
    %80 = arith.truncf %79 : vector<64x32xf32> to vector<64x32xbf16>
    %c2_88 = arith.constant 2 : index
    %c0_89 = arith.constant 0 : index
    %c0_90 = arith.constant 0 : index
    %c0_91 = arith.constant 0 : index
    %81 = vector.load %arg2[%c2_88, %c0_89, %c0_90, %c0_91] : memref<3x3x32x32xbf16, #tpu.memory_space<vmem>>, vector<1x1x32x32xbf16>
    %82 = vector.shape_cast %81 : vector<1x1x32x32xbf16> to vector<32x32xbf16>
    %cst_92 = arith.constant dense<0.000000e+00> : vector<64x32xf32>
    %83 = tpu.matmul %80, %82, %cst_92 {dimension_numbers = #tpu.dot_dimension_numbers<[1], [0], [0], [1], [0, 0, 1, 1], [], []>} : vector<64x32xbf16>, vector<32x32xbf16>, vector<64x32xf32> -> vector<64x32xf32>
    %84 = arith.addf %77, %83 : vector<64x32xf32>
    %c1_93 = arith.constant 1 : index
    %c0_94 = arith.constant 0 : index
    %c0_95 = arith.constant 0 : index
    %85 = vector.load %arg7[%c1_93, %c0_94, %c0_95] : memref<9x9x32xf32, #tpu.memory_space<vmem>>, vector<8x8x32xf32>
    %86 = vector.shape_cast %85 : vector<8x8x32xf32> to vector<64x32xf32>
    %87 = arith.truncf %86 : vector<64x32xf32> to vector<64x32xbf16>
    %c0_96 = arith.constant 0 : index
    %c2_97 = arith.constant 2 : index
    %c0_98 = arith.constant 0 : index
    %c0_99 = arith.constant 0 : index
    %88 = vector.load %arg2[%c0_96, %c2_97, %c0_98, %c0_99] : memref<3x3x32x32xbf16, #tpu.memory_space<vmem>>, vector<1x1x32x32xbf16>
    %89 = vector.shape_cast %88 : vector<1x1x32x32xbf16> to vector<32x32xbf16>
    %cst_100 = arith.constant dense<0.000000e+00> : vector<64x32xf32>
    %90 = tpu.matmul %87, %89, %cst_100 {dimension_numbers = #tpu.dot_dimension_numbers<[1], [0], [0], [1], [0, 0, 1, 1], [], []>} : vector<64x32xbf16>, vector<32x32xbf16>, vector<64x32xf32> -> vector<64x32xf32>
    %91 = arith.addf %84, %90 : vector<64x32xf32>
    %c1_101 = arith.constant 1 : index
    %c1_102 = arith.constant 1 : index
    %c0_103 = arith.constant 0 : index
    %92 = vector.load %arg7[%c1_101, %c1_102, %c0_103] : memref<9x9x32xf32, #tpu.memory_space<vmem>>, vector<8x8x32xf32>
    %93 = vector.shape_cast %92 : vector<8x8x32xf32> to vector<64x32xf32>
    %94 = arith.truncf %93 : vector<64x32xf32> to vector<64x32xbf16>
    %c0_104 = arith.constant 0 : index
    %c0_105 = arith.constant 0 : index
    %c0_106 = arith.constant 0 : index
    %c0_107 = arith.constant 0 : index
    %95 = vector.load %arg2[%c0_104, %c0_105, %c0_106, %c0_107] : memref<3x3x32x32xbf16, #tpu.memory_space<vmem>>, vector<1x1x32x32xbf16>
    %96 = vector.shape_cast %95 : vector<1x1x32x32xbf16> to vector<32x32xbf16>
    %cst_108 = arith.constant dense<0.000000e+00> : vector<64x32xf32>
    %97 = tpu.matmul %94, %96, %cst_108 {dimension_numbers = #tpu.dot_dimension_numbers<[1], [0], [0], [1], [0, 0, 1, 1], [], []>} : vector<64x32xbf16>, vector<32x32xbf16>, vector<64x32xf32> -> vector<64x32xf32>
    %98 = arith.addf %91, %97 : vector<64x32xf32>
    %99 = vector.broadcast %5 : vector<1x32xf32> to vector<64x32xf32>
    %100 = arith.addf %98, %99 : vector<64x32xf32>
    %cst_109 = arith.constant 0.000000e+00 : f32
    %101 = vector.broadcast %cst_109 : f32 to vector<64x32xf32>
    %102 = arith.maximumf %100, %101 : vector<64x32xf32>
    %103 = vector.shape_cast %102 : vector<64x32xf32> to vector<8x8x32xf32>
    %c1_110 = arith.constant 1 : index
    %c1_111 = arith.constant 1 : index
    %c1_112 = arith.constant 1 : index
    %c1_113 = arith.constant 1 : index
    %c0_114 = arith.constant 0 : index
    %104 = vector.load %arg8[%c1_110, %c1_111, %c1_112, %c1_113, %c0_114] : memref<2x2x10x10x32xf32, #tpu.memory_space<vmem>>, vector<1x1x8x8x32xf32>
    %105 = vector.shape_cast %104 : vector<1x1x8x8x32xf32> to vector<8x8x32xf32>
    %106 = vector.shape_cast %103 : vector<8x8x32xf32> to vector<1x1x8x8x32xf32>
    tpu.vector_store %arg8[%c1_110, %c1_111, %c1_112, %c1_113, %c0_114], %106 {strides = array<i32>} : memref<2x2x10x10x32xf32, #tpu.memory_space<vmem>>, vector<1x1x8x8x32xf32>,
    %c0_115 = arith.constant 0 : index
    %c0_116 = arith.constant 0 : index
    %107 = vector.load %arg5[%c0_115, %c0_116] : memref<1x32xf32, #tpu.memory_space<vmem>>, vector<1x32xf32>
    %cst_117 = arith.constant 0.000000e+00 : f32
    %108 = vector.broadcast %cst_117 : f32 to vector<256x32xf32>
    %c1_118 = arith.constant 1 : index
    %c1_119 = arith.constant 1 : index
    %c0_120 = arith.constant 0 : index
    %c0_121 = arith.constant 0 : index
    %c0_122 = arith.constant 0 : index
    %109 = vector.load %arg8[%c1_118, %c1_119, %c0_120, %c0_121, %c0_122] : memref<2x2x10x10x32xf32, #tpu.memory_space<vmem>>, vector<1x1x8x8x32xf32>
    %110 = vector.shape_cast %109 : vector<1x1x8x8x32xf32> to vector<8x8x32xf32>
    %111 = vector.shape_cast %110 : vector<8x8x32xf32> to vector<64x32xf32>
    %112 = arith.truncf %111 : vector<64x32xf32> to vector<64x32xbf16>
    %c1_123 = arith.constant 1 : index
    %c0_124 = arith.constant 0 : index
    %c0_125 = arith.constant 0 : index
    %c1_126 = arith.constant 1 : index
    %c0_127 = arith.constant 0 : index
    %113 = vector.load %arg8[%c1_123, %c0_124, %c0_125, %c1_126, %c0_127] : memref<2x2x10x10x32xf32, #tpu.memory_space<vmem>>, vector<1x1x8x8x32xf32>
    %114 = vector.shape_cast %113 : vector<1x1x8x8x32xf32> to vector<8x8x32xf32>
    %115 = vector.shape_cast %114 : vector<8x8x32xf32> to vector<64x32xf32>
    %116 = arith.truncf %115 : vector<64x32xf32> to vector<64x32xbf16>
    %c0_128 = arith.constant 0 : index
    %c1_129 = arith.constant 1 : index
    %c1_130 = arith.constant 1 : index
    %c0_131 = arith.constant 0 : index
    %c0_132 = arith.constant 0 : index
    %117 = vector.load %arg8[%c0_128, %c1_129, %c1_130, %c0_131, %c0_132] : memref<2x2x10x10x32xf32, #tpu.memory_space<vmem>>, vector<1x1x8x8x32xf32>
    %118 = vector.shape_cast %117 : vector<1x1x8x8x32xf32> to vector<8x8x32xf32>
    %119 = vector.shape_cast %118 : vector<8x8x32xf32> to vector<64x32xf32>
    %120 = arith.truncf %119 : vector<64x32xf32> to vector<64x32xbf16>
    %c0_133 = arith.constant 0 : index
    %c0_134 = arith.constant 0 : index
    %c1_135 = arith.constant 1 : index
    %c1_136 = arith.constant 1 : index
    %c0_137 = arith.constant 0 : index
    %121 = vector.load %arg8[%c0_133, %c0_134, %c1_135, %c1_136, %c0_137] : memref<2x2x10x10x32xf32, #tpu.memory_space<vmem>>, vector<1x1x8x8x32xf32>
    %122 = vector.shape_cast %121 : vector<1x1x8x8x32xf32> to vector<8x8x32xf32>
    %123 = vector.shape_cast %122 : vector<8x8x32xf32> to vector<64x32xf32>
    %124 = arith.truncf %123 : vector<64x32xf32> to vector<64x32xbf16>
    %125 = tpu.concatenate %112, %116, %120, %124 in 0 : vector<64x32xbf16>, vector<64x32xbf16>, vector<64x32xbf16>, vector<64x32xbf16> -> vector<256x32xbf16>
    %c0_138 = arith.constant 0 : index
    %c0_139 = arith.constant 0 : index
    %c0_140 = arith.constant 0 : index
    %c0_141 = arith.constant 0 : index
    %126 = vector.load %arg4[%c0_138, %c0_139, %c0_140, %c0_141] : memref<3x3x32x32xbf16, #tpu.memory_space<vmem>>, vector<1x1x32x32xbf16>
    %127 = vector.shape_cast %126 : vector<1x1x32x32xbf16> to vector<32x32xbf16>
    %cst_142 = arith.constant dense<0.000000e+00> : vector<256x32xf32>
    %128 = tpu.matmul %125, %127, %cst_142 {dimension_numbers = #tpu.dot_dimension_numbers<[1], [0], [0], [1], [0, 0, 1, 1], [], []>} : vector<256x32xbf16>, vector<32x32xbf16>, vector<256x32xf32> -> vector<256x32xf32>
    %129 = arith.addf %108, %128 : vector<256x32xf32>
    %c1_143 = arith.constant 1 : index
    %c0_144 = arith.constant 0 : index
    %c0_145 = arith.constant 0 : index
    %c1_146 = arith.constant 1 : index
    %c0_147 = arith.constant 0 : index
    %130 = vector.load %arg8[%c1_143, %c0_144, %c0_145, %c1_146, %c0_147] : memref<2x2x10x10x32xf32, #tpu.memory_space<vmem>>, vector<1x1x8x8x32xf32>
    %131 = vector.shape_cast %130 : vector<1x1x8x8x32xf32> to vector<8x8x32xf32>
    %132 = vector.shape_cast %131 : vector<8x8x32xf32> to vector<64x32xf32>
    %133 = arith.truncf %132 : vector<64x32xf32> to vector<64x32xbf16>
    %c1_148 = arith.constant 1 : index
    %c1_149 = arith.constant 1 : index
    %c0_150 = arith.constant 0 : index
    %c1_151 = arith.constant 1 : index
    %c0_152 = arith.constant 0 : index
    %134 = vector.load %arg8[%c1_148, %c1_149, %c0_150, %c1_151, %c0_152] : memref<2x2x10x10x32xf32, #tpu.memory_space<vmem>>, vector<1x1x8x8x32xf32>
    %135 = vector.shape_cast %134 : vector<1x1x8x8x32xf32> to vector<8x8x32xf32>
    %136 = vector.shape_cast %135 : vector<8x8x32xf32> to vector<64x32xf32>
    %137 = arith.truncf %136 : vector<64x32xf32> to vector<64x32xbf16>
    %c0_153 = arith.constant 0 : index
    %c0_154 = arith.constant 0 : index
    %c1_155 = arith.constant 1 : index
    %c1_156 = arith.constant 1 : index
    %c0_157 = arith.constant 0 : index
    %138 = vector.load %arg8[%c0_153, %c0_154, %c1_155, %c1_156, %c0_157] : memref<2x2x10x10x32xf32, #tpu.memory_space<vmem>>, vector<1x1x8x8x32xf32>
    %139 = vector.shape_cast %138 : vector<1x1x8x8x32xf32> to vector<8x8x32xf32>
    %140 = vector.shape_cast %139 : vector<8x8x32xf32> to vector<64x32xf32>
    %141 = arith.truncf %140 : vector<64x32xf32> to vector<64x32xbf16>
    %c0_158 = arith.constant 0 : index
    %c1_159 = arith.constant 1 : index
    %c1_160 = arith.constant 1 : index
    %c1_161 = arith.constant 1 : index
    %c0_162 = arith.constant 0 : index
    %142 = vector.load %arg8[%c0_158, %c1_159, %c1_160, %c1_161, %c0_162] : memref<2x2x10x10x32xf32, #tpu.memory_space<vmem>>, vector<1x1x8x8x32xf32>
    %143 = vector.shape_cast %142 : vector<1x1x8x8x32xf32> to vector<8x8x32xf32>
    %144 = vector.shape_cast %143 : vector<8x8x32xf32> to vector<64x32xf32>
    %145 = arith.truncf %144 : vector<64x32xf32> to vector<64x32xbf16>
    %146 = tpu.concatenate %133, %137, %141, %145 in 0 : vector<64x32xbf16>, vector<64x32xbf16>, vector<64x32xbf16>, vector<64x32xbf16> -> vector<256x32xbf16>
    %c0_163 = arith.constant 0 : index
    %c1_164 = arith.constant 1 : index
    %c0_165 = arith.constant 0 : index
    %c0_166 = arith.constant 0 : index
    %147 = vector.load %arg4[%c0_163, %c1_164, %c0_165, %c0_166] : memref<3x3x32x32xbf16, #tpu.memory_space<vmem>>, vector<1x1x32x32xbf16>
    %148 = vector.shape_cast %147 : vector<1x1x32x32xbf16> to vector<32x32xbf16>
    %cst_167 = arith.constant dense<0.000000e+00> : vector<256x32xf32>
    %149 = tpu.matmul %146, %148, %cst_167 {dimension_numbers = #tpu.dot_dimension_numbers<[1], [0], [0], [1], [0, 0, 1, 1], [], []>} : vector<256x32xbf16>, vector<32x32xbf16>, vector<256x32xf32> -> vector<256x32xf32>
    %150 = arith.addf %129, %149 : vector<256x32xf32>
    %c1_168 = arith.constant 1 : index
    %c1_169 = arith.constant 1 : index
    %c0_170 = arith.constant 0 : index
    %c1_171 = arith.constant 1 : index
    %c0_172 = arith.constant 0 : index
    %151 = vector.load %arg8[%c1_168, %c1_169, %c0_170, %c1_171, %c0_172] : memref<2x2x10x10x32xf32, #tpu.memory_space<vmem>>, vector<1x1x8x8x32xf32>
    %152 = vector.shape_cast %151 : vector<1x1x8x8x32xf32> to vector<8x8x32xf32>
    %153 = vector.shape_cast %152 : vector<8x8x32xf32> to vector<64x32xf32>
    %154 = arith.truncf %153 : vector<64x32xf32> to vector<64x32xbf16>
    %c1_173 = arith.constant 1 : index
    %c0_174 = arith.constant 0 : index
    %c0_175 = arith.constant 0 : index
    %c2_176 = arith.constant 2 : index
    %c0_177 = arith.constant 0 : index
    %155 = vector.load %arg8[%c1_173, %c0_174, %c0_175, %c2_176, %c0_177] : memref<2x2x10x10x32xf32, #tpu.memory_space<vmem>>, vector<1x1x8x8x32xf32>
    %156 = vector.shape_cast %155 : vector<1x1x8x8x32xf32> to vector<8x8x32xf32>
    %157 = vector.shape_cast %156 : vector<8x8x32xf32> to vector<64x32xf32>
    %158 = arith.truncf %157 : vector<64x32xf32> to vector<64x32xbf16>
    %c0_178 = arith.constant 0 : index
    %c1_179 = arith.constant 1 : index
    %c1_180 = arith.constant 1 : index
    %c1_181 = arith.constant 1 : index
    %c0_182 = arith.constant 0 : index
    %159 = vector.load %arg8[%c0_178, %c1_179, %c1_180, %c1_181, %c0_182] : memref<2x2x10x10x32xf32, #tpu.memory_space<vmem>>, vector<1x1x8x8x32xf32>
    %160 = vector.shape_cast %159 : vector<1x1x8x8x32xf32> to vector<8x8x32xf32>
    %161 = vector.shape_cast %160 : vector<8x8x32xf32> to vector<64x32xf32>
    %162 = arith.truncf %161 : vector<64x32xf32> to vector<64x32xbf16>
    %c0_183 = arith.constant 0 : index
    %c0_184 = arith.constant 0 : index
    %c1_185 = arith.constant 1 : index
    %c2_186 = arith.constant 2 : index
    %c0_187 = arith.constant 0 : index
    %163 = vector.load %arg8[%c0_183, %c0_184, %c1_185, %c2_186, %c0_187] : memref<2x2x10x10x32xf32, #tpu.memory_space<vmem>>, vector<1x1x8x8x32xf32>
    %164 = vector.shape_cast %163 : vector<1x1x8x8x32xf32> to vector<8x8x32xf32>
    %165 = vector.shape_cast %164 : vector<8x8x32xf32> to vector<64x32xf32>
    %166 = arith.truncf %165 : vector<64x32xf32> to vector<64x32xbf16>
    %167 = tpu.concatenate %154, %158, %162, %166 in 0 : vector<64x32xbf16>, vector<64x32xbf16>, vector<64x32xbf16>, vector<64x32xbf16> -> vector<256x32xbf16>
    %c0_188 = arith.constant 0 : index
    %c2_189 = arith.constant 2 : index
    %c0_190 = arith.constant 0 : index
    %c0_191 = arith.constant 0 : index
    %168 = vector.load %arg4[%c0_188, %c2_189, %c0_190, %c0_191] : memref<3x3x32x32xbf16, #tpu.memory_space<vmem>>, vector<1x1x32x32xbf16>
    %169 = vector.shape_cast %168 : vector<1x1x32x32xbf16> to vector<32x32xbf16>
    %cst_192 = arith.constant dense<0.000000e+00> : vector<256x32xf32>
    %170 = tpu.matmul %167, %169, %cst_192 {dimension_numbers = #tpu.dot_dimension_numbers<[1], [0], [0], [1], [0, 0, 1, 1], [], []>} : vector<256x32xbf16>, vector<32x32xbf16>, vector<256x32xf32> -> vector<256x32xf32>
    %171 = arith.addf %150, %170 : vector<256x32xf32>
    %c0_193 = arith.constant 0 : index
    %c1_194 = arith.constant 1 : index
    %c1_195 = arith.constant 1 : index
    %c0_196 = arith.constant 0 : index
    %c0_197 = arith.constant 0 : index
    %172 = vector.load %arg8[%c0_193, %c1_194, %c1_195, %c0_196, %c0_197] : memref<2x2x10x10x32xf32, #tpu.memory_space<vmem>>, vector<1x1x8x8x32xf32>
    %173 = vector.shape_cast %172 : vector<1x1x8x8x32xf32> to vector<8x8x32xf32>
    %174 = vector.shape_cast %173 : vector<8x8x32xf32> to vector<64x32xf32>
    %175 = arith.truncf %174 : vector<64x32xf32> to vector<64x32xbf16>
    %c0_198 = arith.constant 0 : index
    %c0_199 = arith.constant 0 : index
    %c1_200 = arith.constant 1 : index
    %c1_201 = arith.constant 1 : index
    %c0_202 = arith.constant 0 : index
    %176 = vector.load %arg8[%c0_198, %c0_199, %c1_200, %c1_201, %c0_202] : memref<2x2x10x10x32xf32, #tpu.memory_space<vmem>>, vector<1x1x8x8x32xf32>
    %177 = vector.shape_cast %176 : vector<1x1x8x8x32xf32> to vector<8x8x32xf32>
    %178 = vector.shape_cast %177 : vector<8x8x32xf32> to vector<64x32xf32>
    %179 = arith.truncf %178 : vector<64x32xf32> to vector<64x32xbf16>
    %c1_203 = arith.constant 1 : index
    %c1_204 = arith.constant 1 : index
    %c1_205 = arith.constant 1 : index
    %c0_206 = arith.constant 0 : index
    %c0_207 = arith.constant 0 : index
    %180 = vector.load %arg8[%c1_203, %c1_204, %c1_205, %c0_206, %c0_207] : memref<2x2x10x10x32xf32, #tpu.memory_space<vmem>>, vector<1x1x8x8x32xf32>
    %181 = vector.shape_cast %180 : vector<1x1x8x8x32xf32> to vector<8x8x32xf32>
    %182 = vector.shape_cast %181 : vector<8x8x32xf32> to vector<64x32xf32>
    %183 = arith.truncf %182 : vector<64x32xf32> to vector<64x32xbf16>
    %c1_208 = arith.constant 1 : index
    %c0_209 = arith.constant 0 : index
    %c1_210 = arith.constant 1 : index
    %c1_211 = arith.constant 1 : index
    %c0_212 = arith.constant 0 : index
    %184 = vector.load %arg8[%c1_208, %c0_209, %c1_210, %c1_211, %c0_212] : memref<2x2x10x10x32xf32, #tpu.memory_space<vmem>>, vector<1x1x8x8x32xf32>
    %185 = vector.shape_cast %184 : vector<1x1x8x8x32xf32> to vector<8x8x32xf32>
    %186 = vector.shape_cast %185 : vector<8x8x32xf32> to vector<64x32xf32>
    %187 = arith.truncf %186 : vector<64x32xf32> to vector<64x32xbf16>
    %188 = tpu.concatenate %175, %179, %183, %187 in 0 : vector<64x32xbf16>, vector<64x32xbf16>, vector<64x32xbf16>, vector<64x32xbf16> -> vector<256x32xbf16>
    %c1_213 = arith.constant 1 : index
    %c0_214 = arith.constant 0 : index
    %c0_215 = arith.constant 0 : index
    %c0_216 = arith.constant 0 : index
    %189 = vector.load %arg4[%c1_213, %c0_214, %c0_215, %c0_216] : memref<3x3x32x32xbf16, #tpu.memory_space<vmem>>, vector<1x1x32x32xbf16>
    %190 = vector.shape_cast %189 : vector<1x1x32x32xbf16> to vector<32x32xbf16>
    %cst_217 = arith.constant dense<0.000000e+00> : vector<256x32xf32>
    %191 = tpu.matmul %188, %190, %cst_217 {dimension_numbers = #tpu.dot_dimension_numbers<[1], [0], [0], [1], [0, 0, 1, 1], [], []>} : vector<256x32xbf16>, vector<32x32xbf16>, vector<256x32xf32> -> vector<256x32xf32>
    %192 = arith.addf %171, %191 : vector<256x32xf32>
    %c0_218 = arith.constant 0 : index
    %c0_219 = arith.constant 0 : index
    %c1_220 = arith.constant 1 : index
    %c1_221 = arith.constant 1 : index
    %c0_222 = arith.constant 0 : index
    %193 = vector.load %arg8[%c0_218, %c0_219, %c1_220, %c1_221, %c0_222] : memref<2x2x10x10x32xf32, #tpu.memory_space<vmem>>, vector<1x1x8x8x32xf32>
    %194 = vector.shape_cast %193 : vector<1x1x8x8x32xf32> to vector<8x8x32xf32>
    %195 = vector.shape_cast %194 : vector<8x8x32xf32> to vector<64x32xf32>
    %196 = arith.truncf %195 : vector<64x32xf32> to vector<64x32xbf16>
    %c0_223 = arith.constant 0 : index
    %c1_224 = arith.constant 1 : index
    %c1_225 = arith.constant 1 : index
    %c1_226 = arith.constant 1 : index
    %c0_227 = arith.constant 0 : index
    %197 = vector.load %arg8[%c0_223, %c1_224, %c1_225, %c1_226, %c0_227] : memref<2x2x10x10x32xf32, #tpu.memory_space<vmem>>, vector<1x1x8x8x32xf32>
    %198 = vector.shape_cast %197 : vector<1x1x8x8x32xf32> to vector<8x8x32xf32>
    %199 = vector.shape_cast %198 : vector<8x8x32xf32> to vector<64x32xf32>
    %200 = arith.truncf %199 : vector<64x32xf32> to vector<64x32xbf16>
    %c1_228 = arith.constant 1 : index
    %c0_229 = arith.constant 0 : index
    %c1_230 = arith.constant 1 : index
    %c1_231 = arith.constant 1 : index
    %c0_232 = arith.constant 0 : index
    %201 = vector.load %arg8[%c1_228, %c0_229, %c1_230, %c1_231, %c0_232] : memref<2x2x10x10x32xf32, #tpu.memory_space<vmem>>, vector<1x1x8x8x32xf32>
    %202 = vector.shape_cast %201 : vector<1x1x8x8x32xf32> to vector<8x8x32xf32>
    %203 = vector.shape_cast %202 : vector<8x8x32xf32> to vector<64x32xf32>
    %204 = arith.truncf %203 : vector<64x32xf32> to vector<64x32xbf16>
    %c1_233 = arith.constant 1 : index
    %c1_234 = arith.constant 1 : index
    %c1_235 = arith.constant 1 : index
    %c1_236 = arith.constant 1 : index
    %c0_237 = arith.constant 0 : index
    %205 = vector.load %arg8[%c1_233, %c1_234, %c1_235, %c1_236, %c0_237] : memref<2x2x10x10x32xf32, #tpu.memory_space<vmem>>, vector<1x1x8x8x32xf32>
    %206 = vector.shape_cast %205 : vector<1x1x8x8x32xf32> to vector<8x8x32xf32>
    %207 = vector.shape_cast %206 : vector<8x8x32xf32> to vector<64x32xf32>
    %208 = arith.truncf %207 : vector<64x32xf32> to vector<64x32xbf16>
    %209 = tpu.concatenate %196, %200, %204, %208 in 0 : vector<64x32xbf16>, vector<64x32xbf16>, vector<64x32xbf16>, vector<64x32xbf16> -> vector<256x32xbf16>
    %c1_238 = arith.constant 1 : index
    %c1_239 = arith.constant 1 : index
    %c0_240 = arith.constant 0 : index
    %c0_241 = arith.constant 0 : index
    %210 = vector.load %arg4[%c1_238, %c1_239, %c0_240, %c0_241] : memref<3x3x32x32xbf16, #tpu.memory_space<vmem>>, vector<1x1x32x32xbf16>
    %211 = vector.shape_cast %210 : vector<1x1x32x32xbf16> to vector<32x32xbf16>
    %cst_242 = arith.constant dense<0.000000e+00> : vector<256x32xf32>
    %212 = tpu.matmul %209, %211, %cst_242 {dimension_numbers = #tpu.dot_dimension_numbers<[1], [0], [0], [1], [0, 0, 1, 1], [], []>} : vector<256x32xbf16>, vector<32x32xbf16>, vector<256x32xf32> -> vector<256x32xf32>
    %213 = arith.addf %192, %212 : vector<256x32xf32>
    %c0_243 = arith.constant 0 : index
    %c1_244 = arith.constant 1 : index
    %c1_245 = arith.constant 1 : index
    %c1_246 = arith.constant 1 : index
    %c0_247 = arith.constant 0 : index
    %214 = vector.load %arg8[%c0_243, %c1_244, %c1_245, %c1_246, %c0_247] : memref<2x2x10x10x32xf32, #tpu.memory_space<vmem>>, vector<1x1x8x8x32xf32>
    %215 = vector.shape_cast %214 : vector<1x1x8x8x32xf32> to vector<8x8x32xf32>
    %216 = vector.shape_cast %215 : vector<8x8x32xf32> to vector<64x32xf32>
    %217 = arith.truncf %216 : vector<64x32xf32> to vector<64x32xbf16>
    %c0_248 = arith.constant 0 : index
    %c0_249 = arith.constant 0 : index
    %c1_250 = arith.constant 1 : index
    %c2_251 = arith.constant 2 : index
    %c0_252 = arith.constant 0 : index
    %218 = vector.load %arg8[%c0_248, %c0_249, %c1_250, %c2_251, %c0_252] : memref<2x2x10x10x32xf32, #tpu.memory_space<vmem>>, vector<1x1x8x8x32xf32>
    %219 = vector.shape_cast %218 : vector<1x1x8x8x32xf32> to vector<8x8x32xf32>
    %220 = vector.shape_cast %219 : vector<8x8x32xf32> to vector<64x32xf32>
    %221 = arith.truncf %220 : vector<64x32xf32> to vector<64x32xbf16>
    %c1_253 = arith.constant 1 : index
    %c1_254 = arith.constant 1 : index
    %c1_255 = arith.constant 1 : index
    %c1_256 = arith.constant 1 : index
    %c0_257 = arith.constant 0 : index
    %222 = vector.load %arg8[%c1_253, %c1_254, %c1_255, %c1_256, %c0_257] : memref<2x2x10x10x32xf32, #tpu.memory_space<vmem>>, vector<1x1x8x8x32xf32>
    %223 = vector.shape_cast %222 : vector<1x1x8x8x32xf32> to vector<8x8x32xf32>
    %224 = vector.shape_cast %223 : vector<8x8x32xf32> to vector<64x32xf32>
    %225 = arith.truncf %224 : vector<64x32xf32> to vector<64x32xbf16>
    %c1_258 = arith.constant 1 : index
    %c0_259 = arith.constant 0 : index
    %c1_260 = arith.constant 1 : index
    %c2_261 = arith.constant 2 : index
    %c0_262 = arith.constant 0 : index
    %226 = vector.load %arg8[%c1_258, %c0_259, %c1_260, %c2_261, %c0_262] : memref<2x2x10x10x32xf32, #tpu.memory_space<vmem>>, vector<1x1x8x8x32xf32>
    %227 = vector.shape_cast %226 : vector<1x1x8x8x32xf32> to vector<8x8x32xf32>
    %228 = vector.shape_cast %227 : vector<8x8x32xf32> to vector<64x32xf32>
    %229 = arith.truncf %228 : vector<64x32xf32> to vector<64x32xbf16>
    %230 = tpu.concatenate %217, %221, %225, %229 in 0 : vector<64x32xbf16>, vector<64x32xbf16>, vector<64x32xbf16>, vector<64x32xbf16> -> vector<256x32xbf16>
    %c1_263 = arith.constant 1 : index
    %c2_264 = arith.constant 2 : index
    %c0_265 = arith.constant 0 : index
    %c0_266 = arith.constant 0 : index
    %231 = vector.load %arg4[%c1_263, %c2_264, %c0_265, %c0_266] : memref<3x3x32x32xbf16, #tpu.memory_space<vmem>>, vector<1x1x32x32xbf16>
    %232 = vector.shape_cast %231 : vector<1x1x32x32xbf16> to vector<32x32xbf16>
    %cst_267 = arith.constant dense<0.000000e+00> : vector<256x32xf32>
    %233 = tpu.matmul %230, %232, %cst_267 {dimension_numbers = #tpu.dot_dimension_numbers<[1], [0], [0], [1], [0, 0, 1, 1], [], []>} : vector<256x32xbf16>, vector<32x32xbf16>, vector<256x32xf32> -> vector<256x32xf32>
    %234 = arith.addf %213, %233 : vector<256x32xf32>
    %c1_268 = arith.constant 1 : index
    %c1_269 = arith.constant 1 : index
    %c1_270 = arith.constant 1 : index
    %c0_271 = arith.constant 0 : index
    %c0_272 = arith.constant 0 : index
    %235 = vector.load %arg8[%c1_268, %c1_269, %c1_270, %c0_271, %c0_272] : memref<2x2x10x10x32xf32, #tpu.memory_space<vmem>>, vector<1x1x8x8x32xf32>
    %236 = vector.shape_cast %235 : vector<1x1x8x8x32xf32> to vector<8x8x32xf32>
    %237 = vector.shape_cast %236 : vector<8x8x32xf32> to vector<64x32xf32>
    %238 = arith.truncf %237 : vector<64x32xf32> to vector<64x32xbf16>
    %c1_273 = arith.constant 1 : index
    %c0_274 = arith.constant 0 : index
    %c1_275 = arith.constant 1 : index
    %c1_276 = arith.constant 1 : index
    %c0_277 = arith.constant 0 : index
    %239 = vector.load %arg8[%c1_273, %c0_274, %c1_275, %c1_276, %c0_277] : memref<2x2x10x10x32xf32, #tpu.memory_space<vmem>>, vector<1x1x8x8x32xf32>
    %240 = vector.shape_cast %239 : vector<1x1x8x8x32xf32> to vector<8x8x32xf32>
    %241 = vector.shape_cast %240 : vector<8x8x32xf32> to vector<64x32xf32>
    %242 = arith.truncf %241 : vector<64x32xf32> to vector<64x32xbf16>
    %c0_278 = arith.constant 0 : index
    %c1_279 = arith.constant 1 : index
    %c2_280 = arith.constant 2 : index
    %c0_281 = arith.constant 0 : index
    %c0_282 = arith.constant 0 : index
    %243 = vector.load %arg8[%c0_278, %c1_279, %c2_280, %c0_281, %c0_282] : memref<2x2x10x10x32xf32, #tpu.memory_space<vmem>>, vector<1x1x8x8x32xf32>
    %244 = vector.shape_cast %243 : vector<1x1x8x8x32xf32> to vector<8x8x32xf32>
    %245 = vector.shape_cast %244 : vector<8x8x32xf32> to vector<64x32xf32>
    %246 = arith.truncf %245 : vector<64x32xf32> to vector<64x32xbf16>
    %c0_283 = arith.constant 0 : index
    %c0_284 = arith.constant 0 : index
    %c2_285 = arith.constant 2 : index
    %c1_286 = arith.constant 1 : index
    %c0_287 = arith.constant 0 : index
    %247 = vector.load %arg8[%c0_283, %c0_284, %c2_285, %c1_286, %c0_287] : memref<2x2x10x10x32xf32, #tpu.memory_space<vmem>>, vector<1x1x8x8x32xf32>
    %248 = vector.shape_cast %247 : vector<1x1x8x8x32xf32> to vector<8x8x32xf32>
    %249 = vector.shape_cast %248 : vector<8x8x32xf32> to vector<64x32xf32>
    %250 = arith.truncf %249 : vector<64x32xf32> to vector<64x32xbf16>
    %251 = tpu.concatenate %238, %242, %246, %250 in 0 : vector<64x32xbf16>, vector<64x32xbf16>, vector<64x32xbf16>, vector<64x32xbf16> -> vector<256x32xbf16>
    %c2_288 = arith.constant 2 : index
    %c0_289 = arith.constant 0 : index
    %c0_290 = arith.constant 0 : index
    %c0_291 = arith.constant 0 : index
    %252 = vector.load %arg4[%c2_288, %c0_289, %c0_290, %c0_291] : memref<3x3x32x32xbf16, #tpu.memory_space<vmem>>, vector<1x1x32x32xbf16>
    %253 = vector.shape_cast %252 : vector<1x1x32x32xbf16> to vector<32x32xbf16>
    %cst_292 = arith.constant dense<0.000000e+00> : vector<256x32xf32>
    %254 = tpu.matmul %251, %253, %cst_292 {dimension_numbers = #tpu.dot_dimension_numbers<[1], [0], [0], [1], [0, 0, 1, 1], [], []>} : vector<256x32xbf16>, vector<32x32xbf16>, vector<256x32xf32> -> vector<256x32xf32>
    %255 = arith.addf %234, %254 : vector<256x32xf32>
    %c1_293 = arith.constant 1 : index
    %c0_294 = arith.constant 0 : index
    %c1_295 = arith.constant 1 : index
    %c1_296 = arith.constant 1 : index
    %c0_297 = arith.constant 0 : index
    %256 = vector.load %arg8[%c1_293, %c0_294, %c1_295, %c1_296, %c0_297] : memref<2x2x10x10x32xf32, #tpu.memory_space<vmem>>, vector<1x1x8x8x32xf32>
    %257 = vector.shape_cast %256 : vector<1x1x8x8x32xf32> to vector<8x8x32xf32>
    %258 = vector.shape_cast %257 : vector<8x8x32xf32> to vector<64x32xf32>
    %259 = arith.truncf %258 : vector<64x32xf32> to vector<64x32xbf16>
    %c1_298 = arith.constant 1 : index
    %c1_299 = arith.constant 1 : index
    %c1_300 = arith.constant 1 : index
    %c1_301 = arith.constant 1 : index
    %c0_302 = arith.constant 0 : index
    %260 = vector.load %arg8[%c1_298, %c1_299, %c1_300, %c1_301, %c0_302] : memref<2x2x10x10x32xf32, #tpu.memory_space<vmem>>, vector<1x1x8x8x32xf32>
    %261 = vector.shape_cast %260 : vector<1x1x8x8x32xf32> to vector<8x8x32xf32>
    %262 = vector.shape_cast %261 : vector<8x8x32xf32> to vector<64x32xf32>
    %263 = arith.truncf %262 : vector<64x32xf32> to vector<64x32xbf16>
    %c0_303 = arith.constant 0 : index
    %c0_304 = arith.constant 0 : index
    %c2_305 = arith.constant 2 : index
    %c1_306 = arith.constant 1 : index
    %c0_307 = arith.constant 0 : index
    %264 = vector.load %arg8[%c0_303, %c0_304, %c2_305, %c1_306, %c0_307] : memref<2x2x10x10x32xf32, #tpu.memory_space<vmem>>, vector<1x1x8x8x32xf32>
    %265 = vector.shape_cast %264 : vector<1x1x8x8x32xf32> to vector<8x8x32xf32>
    %266 = vector.shape_cast %265 : vector<8x8x32xf32> to vector<64x32xf32>
    %267 = arith.truncf %266 : vector<64x32xf32> to vector<64x32xbf16>
    %c0_308 = arith.constant 0 : index
    %c1_309 = arith.constant 1 : index
    %c2_310 = arith.constant 2 : index
    %c1_311 = arith.constant 1 : index
    %c0_312 = arith.constant 0 : index
    %268 = vector.load %arg8[%c0_308, %c1_309, %c2_310, %c1_311, %c0_312] : memref<2x2x10x10x32xf32, #tpu.memory_space<vmem>>, vector<1x1x8x8x32xf32>
    %269 = vector.shape_cast %268 : vector<1x1x8x8x32xf32> to vector<8x8x32xf32>
    %270 = vector.shape_cast %269 : vector<8x8x32xf32> to vector<64x32xf32>
    %271 = arith.truncf %270 : vector<64x32xf32> to vector<64x32xbf16>
    %272 = tpu.concatenate %259, %263, %267, %271 in 0 : vector<64x32xbf16>, vector<64x32xbf16>, vector<64x32xbf16>, vector<64x32xbf16> -> vector<256x32xbf16>
    %c2_313 = arith.constant 2 : index
    %c1_314 = arith.constant 1 : index
    %c0_315 = arith.constant 0 : index
    %c0_316 = arith.constant 0 : index
    %273 = vector.load %arg4[%c2_313, %c1_314, %c0_315, %c0_316] : memref<3x3x32x32xbf16, #tpu.memory_space<vmem>>, vector<1x1x32x32xbf16>
    %274 = vector.shape_cast %273 : vector<1x1x32x32xbf16> to vector<32x32xbf16>
    %cst_317 = arith.constant dense<0.000000e+00> : vector<256x32xf32>
    %275 = tpu.matmul %272, %274, %cst_317 {dimension_numbers = #tpu.dot_dimension_numbers<[1], [0], [0], [1], [0, 0, 1, 1], [], []>} : vector<256x32xbf16>, vector<32x32xbf16>, vector<256x32xf32> -> vector<256x32xf32>
    %276 = arith.addf %255, %275 : vector<256x32xf32>
    %c1_318 = arith.constant 1 : index
    %c1_319 = arith.constant 1 : index
    %c1_320 = arith.constant 1 : index
    %c1_321 = arith.constant 1 : index
    %c0_322 = arith.constant 0 : index
    %277 = vector.load %arg8[%c1_318, %c1_319, %c1_320, %c1_321, %c0_322] : memref<2x2x10x10x32xf32, #tpu.memory_space<vmem>>, vector<1x1x8x8x32xf32>
    %278 = vector.shape_cast %277 : vector<1x1x8x8x32xf32> to vector<8x8x32xf32>
    %279 = vector.shape_cast %278 : vector<8x8x32xf32> to vector<64x32xf32>
    %280 = arith.truncf %279 : vector<64x32xf32> to vector<64x32xbf16>
    %c1_323 = arith.constant 1 : index
    %c0_324 = arith.constant 0 : index
    %c1_325 = arith.constant 1 : index
    %c2_326 = arith.constant 2 : index
    %c0_327 = arith.constant 0 : index
    %281 = vector.load %arg8[%c1_323, %c0_324, %c1_325, %c2_326, %c0_327] : memref<2x2x10x10x32xf32, #tpu.memory_space<vmem>>, vector<1x1x8x8x32xf32>
    %282 = vector.shape_cast %281 : vector<1x1x8x8x32xf32> to vector<8x8x32xf32>
    %283 = vector.shape_cast %282 : vector<8x8x32xf32> to vector<64x32xf32>
    %284 = arith.truncf %283 : vector<64x32xf32> to vector<64x32xbf16>
    %c0_328 = arith.constant 0 : index
    %c1_329 = arith.constant 1 : index
    %c2_330 = arith.constant 2 : index
    %c1_331 = arith.constant 1 : index
    %c0_332 = arith.constant 0 : index
    %285 = vector.load %arg8[%c0_328, %c1_329, %c2_330, %c1_331, %c0_332] : memref<2x2x10x10x32xf32, #tpu.memory_space<vmem>>, vector<1x1x8x8x32xf32>
    %286 = vector.shape_cast %285 : vector<1x1x8x8x32xf32> to vector<8x8x32xf32>
    %287 = vector.shape_cast %286 : vector<8x8x32xf32> to vector<64x32xf32>
    %288 = arith.truncf %287 : vector<64x32xf32> to vector<64x32xbf16>
    %c0_333 = arith.constant 0 : index
    %c0_334 = arith.constant 0 : index
    %c2_335 = arith.constant 2 : index
    %c2_336 = arith.constant 2 : index
    %c0_337 = arith.constant 0 : index
    %289 = vector.load %arg8[%c0_333, %c0_334, %c2_335, %c2_336, %c0_337] : memref<2x2x10x10x32xf32, #tpu.memory_space<vmem>>, vector<1x1x8x8x32xf32>
    %290 = vector.shape_cast %289 : vector<1x1x8x8x32xf32> to vector<8x8x32xf32>
    %291 = vector.shape_cast %290 : vector<8x8x32xf32> to vector<64x32xf32>
    %292 = arith.truncf %291 : vector<64x32xf32> to vector<64x32xbf16>
    %293 = tpu.concatenate %280, %284, %288, %292 in 0 : vector<64x32xbf16>, vector<64x32xbf16>, vector<64x32xbf16>, vector<64x32xbf16> -> vector<256x32xbf16>
    %c2_338 = arith.constant 2 : index
    %c2_339 = arith.constant 2 : index
    %c0_340 = arith.constant 0 : index
    %c0_341 = arith.constant 0 : index
    %294 = vector.load %arg4[%c2_338, %c2_339, %c0_340, %c0_341] : memref<3x3x32x32xbf16, #tpu.memory_space<vmem>>, vector<1x1x32x32xbf16>
    %295 = vector.shape_cast %294 : vector<1x1x32x32xbf16> to vector<32x32xbf16>
    %cst_342 = arith.constant dense<0.000000e+00> : vector<256x32xf32>
    %296 = tpu.matmul %293, %295, %cst_342 {dimension_numbers = #tpu.dot_dimension_numbers<[1], [0], [0], [1], [0, 0, 1, 1], [], []>} : vector<256x32xbf16>, vector<32x32xbf16>, vector<256x32xf32> -> vector<256x32xf32>
    %297 = arith.addf %276, %296 : vector<256x32xf32>
    %298 = vector.broadcast %107 : vector<1x32xf32> to vector<256x32xf32>
    %299 = arith.addf %297, %298 : vector<256x32xf32>
    %cst_343 = arith.constant 0.000000e+00 : f32
    %300 = vector.broadcast %cst_343 : f32 to vector<256x32xf32>
    %301 = arith.maximumf %299, %300 : vector<256x32xf32>
    %302 = vector.shape_cast %301 : vector<256x32xf32> to vector<2x2x64x32xf32>
    %c0_344 = arith.constant 0 : index
    %c0_345 = arith.constant 0 : index
    %c0_346 = arith.constant 0 : index
    %c0_347 = arith.constant 0 : index
    %c0_348 = arith.constant 0 : index
    %303 = vector.load %arg6[%c0_344, %c0_345, %c0_346, %c0_347, %c0_348] : memref<1x2x2x64x32xf32, #tpu.memory_space<vmem>>, vector<1x2x2x64x32xf32>
    %304 = vector.shape_cast %303 : vector<1x2x2x64x32xf32> to vector<2x2x64x32xf32>
    %305 = vector.shape_cast %302 : vector<2x2x64x32xf32> to vector<1x2x2x64x32xf32>
    tpu.vector_store %arg6[%c0_344, %c0_345, %c0_346, %c0_347, %c0_348], %305 {strides = array<i32>} : memref<1x2x2x64x32xf32, #tpu.memory_space<vmem>>, vector<1x2x2x64x32xf32>,
    return
  }
  func.func @transform_0(%arg0: i32) -> (i32, i32, i32, i32) {
    %c0_i32 = arith.constant 0 : i32
    %c0_i32_0 = arith.constant 0 : i32
    %c0_i32_1 = arith.constant 0 : i32
    %c0_i32_2 = arith.constant 0 : i32
    return %arg0, %c0_i32, %c0_i32_0, %c0_i32_1 : i32, i32, i32, i32
  }
  func.func @transform_1(%arg0: i32) -> (i32, i32, i32, i32) {
    %c0_i32 = arith.constant 0 : i32
    %c0_i32_0 = arith.constant 0 : i32
    %c0_i32_1 = arith.constant 0 : i32
    %c0_i32_2 = arith.constant 0 : i32
    %c0_i32_3 = arith.constant 0 : i32
    return %c0_i32, %c0_i32_0, %c0_i32_1, %c0_i32_2 : i32, i32, i32, i32
  }
  func.func @transform_2(%arg0: i32) -> (i32, i32) {
    %c0_i32 = arith.constant 0 : i32
    %c0_i32_0 = arith.constant 0 : i32
    %c0_i32_1 = arith.constant 0 : i32
    return %c0_i32, %c0_i32_0 : i32, i32
  }
  func.func @transform_3(%arg0: i32) -> (i32, i32, i32, i32) {
    %c0_i32 = arith.constant 0 : i32
    %c0_i32_0 = arith.constant 0 : i32
    %c0_i32_1 = arith.constant 0 : i32
    %c0_i32_2 = arith.constant 0 : i32
    %c0_i32_3 = arith.constant 0 : i32
    return %c0_i32, %c0_i32_0, %c0_i32_1, %c0_i32_2 : i32, i32, i32, i32
  }
  func.func @transform_4(%arg0: i32) -> (i32, i32) {
    %c0_i32 = arith.constant 0 : i32
    %c0_i32_0 = arith.constant 0 : i32
    %c0_i32_1 = arith.constant 0 : i32
    return %c0_i32, %c0_i32_0 : i32, i32
  }
  func.func @transform_5(%arg0: i32) -> (i32, i32, i32, i32, i32) {
    %c0_i32 = arith.constant 0 : i32
    %c0_i32_0 = arith.constant 0 : i32
    %c0_i32_1 = arith.constant 0 : i32
    %c0_i32_2 = arith.constant 0 : i32
    %c0_i32_3 = arith.constant 0 : i32
    return %arg0, %c0_i32, %c0_i32_0, %c0_i32_1, %c0_i32_2 : i32, i32, i32, i32, i32
  }
}

</mosaic_0001>

<bundles_post_ra>
// kernel: upsample_forward.1
= control target key start
LH: loop header
LB: loop body
LE: loop exit
PB: predicated region body
PF: predicated region fallthrough
CT: control target
= control target key end

     0   :  { %s5110_s18 = smov 0   ;;  %s6245_s0 = inlined_call_operand.vmem [shape: f32[2,8,8,32], index: 0, kind: input, shape index: {}]   ;;  %s6246_s1 = inlined_call_operand.vmem [shape: bf16[3,3,32,32], index: 1, kind: input, shape index: {}]   ;;  %s6247_s2 = inlined_call_operand.vmem [shape: f32[1,32], index: 2, kind: input, shape index: {}]   ;;  %s6248_s3 = inlined_call_operand.vmem [shape: bf16[3,3,32,32], index: 3, kind: input, shape index: {}]   ;;  %s6249_s4 = inlined_call_operand.vmem [shape: f32[1,32], index: 4, kind: input, shape index: {}]   ;;  %s6250_s5 = inlined_call_operand.vmem [shape: f32[2,2,2,64,32], index: 5, kind: output, shape index: {}]  }
   0x1 LB: > { %s3783_s19 = sadd.s32 4294967295, %s5077_s18   ;;  %p3787_p0 = scmp.ge.s32.totalorder %s5077_s18, 1  ;;  %s5077_s18 = sphi %s5110_s18, %s15_s18  }
   0x2   : > { %p187_p1 = scmp.lt.s32.totalorder %s5077_s18, 3 }
   0x4   : > { %p188_p2 = pnand %p3787_p0, %p187_p1 }
   0x6   : > { %191 = sbr.rel (%p188_p2) target bundleno = 877 (0x36d), region = 40 }
   0xd   : > { %v5035_v0 = vld [vmem:[%s6246_s1 + $0x40] sm:$0xff]   ;;  %p215_p3 = scmp.lt.s32.totalorder %s3783_s19, 1  ;;  %v5124_v1 = vld [vmem:[%s6246_s1 + $0x48] sm:$0xff]   ;;  %vm226_vm0 = vcmask 261120   ;;  %v5079_v2 = vmov 0.0   ;;  %vm228_vm1 = vcmask 253952  }
   0xe   : > { %4726 = vmatprep.subr.bf16.mxu1 %v5035_v0  ;;  %4294 = vmatprep.subr.bf16.mxu0 %v5035_v0  ;;  %227 = vst.msk [vmem:[#allocation2] sm:$0xff] %vm226_vm0, %v5079_v2  ;;  %230 = vst.msk [vmem:[#allocation2 + $0x10] sm:$0xff] %vm226_vm0, %v5079_v2  ;;  %v5224_v3 = vld [vmem:[%s6246_s1 + $0x30] sm:$0xff]   ;;  %vm264_vm2 = vcmask 254976   ;;  %v5038_v20 = vld [vmem:[%s6246_s1 + $0x38] sm:$0xff]  }
   0xf   : > { %s6276_s19 = smov (!%p215_p3, %s3783_s19), 1  ;;  %4728 = vmatpush3.bf16.msra.mxu1 %v5035_v0  ;;  %4295 = vmatpush3.bf16.msra.mxu0 %v5035_v0  ;;  %232 = vst.msk [vmem:[#allocation2 + $0x20] sm:$0xff] %vm226_vm0, %v5079_v2  ;;  %234 = vst.msk [vmem:[#allocation2 + $0x30] sm:$0xff] %vm226_vm0, %v5079_v2  ;;  %v5041_v12 = vld [vmem:[%s6246_s1 + $0x10] sm:$0xff]   ;;  %v5043_v21 = vld [vmem:[%s6246_s1 + $0x18] sm:$0xff]  }
  0x10   : > { %236 = vst.msk [vmem:[#allocation2 + $0x40] sm:$0xff] %vm226_vm0, %v5079_v2  ;;  %238 = vst.msk [vmem:[#allocation2 + $0x50] sm:$0xff] %vm226_vm0, %v5079_v2  ;;  %4727 = vmatprep.subr.bf16.mxu1 %v5124_v1  ;;  %4296 = vmatprep.subr.bf16.mxu0 %v5124_v1  ;;  %s4076_s24 = sshll.u32 %s6276_s19, 6  ;;  %v5045_v39 = vld [vmem:[%s6246_s1 + $0x70] sm:$0xff]   ;;  %v5040_v45 = vld [vmem:[%s6246_s1 + $0x58] sm:$0xff]   ;;  %s4077_s6 = sshll.u32 %s6276_s19, 8 }
  0x11   : > { %240 = vst.msk [vmem:[#allocation2 + $0x60] sm:$0xff] %vm226_vm0, %v5079_v2  ;;  %242 = vst.msk [vmem:[#allocation2 + $0x70] sm:$0xff] %vm226_vm0, %v5079_v2  ;;  %s5238_s29 = scalar_lea.vmem %s6245_s0, %s4076_s24  ;;  %v5039_v40 = vld [vmem:[%s6246_s1 + $0x50] sm:$0xff]   ;;  %v5047_v48 = vld [vmem:[%s6246_s1 + $0x78] sm:$0xff]   ;;  %s6098_s9 = scalar_lea.vmem %s6250_s5, %s4077_s6 }
  0x12   : > { %244 = vst.msk [vmem:[#allocation2 + $0x80] sm:$0xff] %vm226_vm0, %v5079_v2  ;;  %266 = vst.msk [vmem:[#allocation3 + $0x10] sm:$0xff] %vm226_vm0, %v5079_v2  ;;  %v246_v4 = vld [vmem:[%s5238_s29] sm:$0xff]  ;;  %v247_v5 = vld [vmem:[%s5238_s29 + $0x8] sm:$0xff] }
  0x13   : > { %268 = vst.msk [vmem:[#allocation3 + $0x20] sm:$0xff] %vm226_vm0, %v5079_v2  ;;  %270 = vst.msk [vmem:[#allocation3 + $0x30] sm:$0xff] %vm226_vm0, %v5079_v2  ;;  %v250_v6 = vld [vmem:[%s5238_s29 + $0x20] sm:$0xff]  ;;  %4729 = vmatpush3.bf16.msra.mxu1 %v5124_v1  ;;  %4297 = vmatpush3.bf16.msra.mxu0 %v5124_v1  ;;  %v251_v7 = vld [vmem:[%s5238_s29 + $0x28] sm:$0xff] }
  0x14   : > { %272 = vst.msk [vmem:[#allocation3 + $0x40] sm:$0xff] %vm226_vm0, %v5079_v2  ;;  %274 = vst.msk [vmem:[#allocation3 + $0x50] sm:$0xff] %vm226_vm0, %v5079_v2  ;;  %v248_v8 = vld [vmem:[%s5238_s29 + $0x10] sm:$0xff]  ;;  %v249_v9 = vld [vmem:[%s5238_s29 + $0x18] sm:$0xff]  ;;  %4306 = vmatprep.subr.bf16.mxu1 %v5224_v3  ;;  %4330 = vmatprep.subr.bf16.mxu0 %v5041_v12 }
  0x15   : > { %276 = vst.msk [vmem:[#allocation3 + $0x60] sm:$0xff] %vm226_vm0, %v5079_v2  ;;  %278 = vst.msk [vmem:[#allocation3 + $0x70] sm:$0xff] %vm226_vm0, %v5079_v2  ;;  %v252_v10 = vld [vmem:[%s5238_s29 + $0x30] sm:$0xff]  ;;  %v253_v11 = vld [vmem:[%s5238_s29 + $0x38] sm:$0xff] }
  0x16   : > { %280 = vst.msk [vmem:[#allocation3 + $0x80] sm:$0xff] %vm226_vm0, %v5079_v2  ;;  %282 = vst.msk [vmem:[#allocation3 + $0x90] sm:$0xff] %vm226_vm0, %v5079_v2  ;;  %v5042_v49 = vld [vmem:[%s6246_s1 + $0x60] sm:$0xff]   ;;  %v5044_v52 = vld [vmem:[%s6246_s1 + $0x68] sm:$0xff]  }
  0x17   : > { %286 = vst.msk [vmem:[#allocation3 + $0xb0] sm:$0xff] %vm226_vm0, %v5079_v2  ;;  %288 = vst.msk [vmem:[#allocation3 + $0xc0] sm:$0xff] %vm226_vm0, %v5079_v2  ;;  %v5046_v53 = vld [vmem:[%s6246_s1 + $0x80] sm:$0xff]   ;;  %v5048_v54 = vld [vmem:[%s6246_s1 + $0x88] sm:$0xff]  }
  0x18   : > { %290 = vst.msk [vmem:[#allocation3 + $0xd0] sm:$0xff] %vm226_vm0, %v5079_v2  ;;  %292 = vst.msk [vmem:[#allocation3 + $0xe0] sm:$0xff] %vm226_vm0, %v5079_v2  ;;  %v5049_v55 = vld [vmem:[%s6246_s1 + $0x20] sm:$0xff]   ;;  %v5050_v56 = vld [vmem:[%s6246_s1 + $0x28] sm:$0xff]  }
  0x19   : > { %294 = vst.msk [vmem:[#allocation3 + $0xf0] sm:$0xff] %vm226_vm0, %v5079_v2  ;;  %296 = vst.msk [vmem:[#allocation3 + $0x100] sm:$0xff] %vm226_vm0, %v5079_v2  ;;  %v735_v46 = vld [vmem:[#allocation2 + $0x80] sm:$0xff]  ;;  %v5052_v58 = vld [vmem:[%s6246_s1 + $0x8] sm:$0xff]  }
  0x1a   : > { %298 = vst.msk [vmem:[#allocation3 + $0x110] sm:$0xff] %vm226_vm0, %v5079_v2  ;;  %300 = vst.msk [vmem:[#allocation3 + $0x120] sm:$0xff] %vm226_vm0, %v5079_v2  ;;  %v5051_v57 = vld [vmem:[%s6246_s1] sm:$0xff]   ;;  %v5054_v61 = vld [vmem:[%s6248_s3 + $0x48] sm:$0xff]  }
  0x1b   : > { %302 = vst.msk [vmem:[#allocation3 + $0x130] sm:$0xff] %vm226_vm0, %v5079_v2  ;;  %304 = vst.msk [vmem:[#allocation3 + $0x140] sm:$0xff] %vm226_vm0, %v5079_v2  ;;  %v5053_v60 = vld [vmem:[%s6248_s3 + $0x40] sm:$0xff]   ;;  %v5495_v63 = vld [vmem:[%s6248_s3 + $0x50] sm:$0xff]  }
  0x1c   : > { %306 = vst.msk [vmem:[#allocation3 + $0x150] sm:$0xff] %vm226_vm0, %v5079_v2  ;;  %308 = vst.msk [vmem:[#allocation3 + $0x160] sm:$0xff] %vm226_vm0, %v5079_v2  ;;  %v5056_v0 = vld [vmem:[%s6248_s3 + $0x10] sm:$0xff]   ;;  %v5057_v1 = vld [vmem:[%s6248_s3 + $0x18] sm:$0xff]  }
  0x1d   : > { %310 = vst.msk [vmem:[#allocation3 + $0x170] sm:$0xff] %vm226_vm0, %v5079_v2  ;;  %312 = vst.msk [vmem:[#allocation3 + $0x180] sm:$0xff] %vm226_vm0, %v5079_v2 }
  0x1e   : > { %314 = vst.msk [vmem:[#allocation3 + $0x190] sm:$0xff] %vm226_vm0, %v5079_v2  ;;  %316 = vst.msk [vmem:[#allocation3 + $0x1a0] sm:$0xff] %vm226_vm0, %v5079_v2 }
  0x1f   : > { %318 = vst.msk [vmem:[#allocation3 + $0x1b0] sm:$0xff] %vm226_vm0, %v5079_v2  ;;  %320 = vst.msk [vmem:[#allocation3 + $0x1c0] sm:$0xff] %vm226_vm0, %v5079_v2 }
  0x20   : > { %324 = vst.msk [vmem:[#allocation3 + $0x1e0] sm:$0xff] %vm226_vm0, %v5079_v2  ;;  %326 = vst.msk [vmem:[#allocation3 + $0x1f0] sm:$0xff] %vm226_vm0, %v5079_v2 }
  0x21   : > { %328 = vst.msk [vmem:[#allocation3 + $0x200] sm:$0xff] %vm226_vm0, %v5079_v2  ;;  %330 = vst.msk [vmem:[#allocation3 + $0x210] sm:$0xff] %vm226_vm0, %v5079_v2 }
  0x22   : > { %332 = vst.msk [vmem:[#allocation3 + $0x220] sm:$0xff] %vm226_vm0, %v5079_v2  ;;  %334 = vst.msk [vmem:[#allocation3 + $0x230] sm:$0xff] %vm226_vm0, %v5079_v2 }
  0x23   : > { %336 = vst.msk [vmem:[#allocation3 + $0x240] sm:$0xff] %vm226_vm0, %v5079_v2  ;;  %338 = vst.msk [vmem:[#allocation3 + $0x250] sm:$0xff] %vm226_vm0, %v5079_v2 }
  0x24   : > { %340 = vst.msk [vmem:[#allocation3 + $0x260] sm:$0xff] %vm226_vm0, %v5079_v2  ;;  %254 = vst.msk [vmem:[#allocation2] sm:$0xff] %vm226_vm0, %v246_v4 }
  0x25   : > { %229 = vst.msk [vmem:[#allocation2 + $0x8] sm:$0x1] %vm228_vm1, %v5079_v2  ;;  %231 = vst.msk [vmem:[#allocation2 + $0x18] sm:$0x1] %vm228_vm1, %v5079_v2 }
  0x26   : > { %233 = vst.msk [vmem:[#allocation2 + $0x28] sm:$0x1] %vm228_vm1, %v5079_v2  ;;  %235 = vst.msk [vmem:[#allocation2 + $0x38] sm:$0x1] %vm228_vm1, %v5079_v2 }
  0x27   : > { %237 = vst.msk [vmem:[#allocation2 + $0x48] sm:$0x1] %vm228_vm1, %v5079_v2  ;;  %239 = vst.msk [vmem:[#allocation2 + $0x58] sm:$0x1] %vm228_vm1, %v5079_v2 }
  0x28   : > { %241 = vst.msk [vmem:[#allocation2 + $0x68] sm:$0x1] %vm228_vm1, %v5079_v2  ;;  %243 = vst.msk [vmem:[#allocation2 + $0x78] sm:$0x1] %vm228_vm1, %v5079_v2 }
  0x29   : > { %245 = vst.msk [vmem:[#allocation2 + $0x88] sm:$0x1] %vm228_vm1, %v5079_v2 }
  0x2a   : > { %255 = vst.msk [vmem:[#allocation2 + $0x10] sm:$0xff] %vm226_vm0, %v247_v5  ;;  %258 = vst.msk [vmem:[#allocation2 + $0x40] sm:$0xff] %vm226_vm0, %v250_v6 }
  0x2b   : > { %271 = vst.msk [vmem:[#allocation3 + $0x38] sm:$0x3] %vm264_vm2, %v5079_v2  ;;  %267 = vst.msk [vmem:[#allocation3 + $0x18] sm:$0x3] %vm264_vm2, %v5079_v2  ;;  %v344_v13 = vld [vmem:[#allocation2] sm:$0xff] }
  0x2c   : > { %269 = vst.msk [vmem:[#allocation3 + $0x28] sm:$0x3] %vm264_vm2, %v5079_v2  ;;  %273 = vst.msk [vmem:[#allocation3 + $0x48] sm:$0x3] %vm264_vm2, %v5079_v2  ;;  %v490_v26 = vld [vmem:[#allocation2 + $0x1] sm:$0xff] }
  0x2d   : > { %275 = vst.msk [vmem:[#allocation3 + $0x58] sm:$0x3] %vm264_vm2, %v5079_v2  ;;  %277 = vst.msk [vmem:[#allocation3 + $0x68] sm:$0x3] %vm264_vm2, %v5079_v2 }
  0x2e   : > { %279 = vst.msk [vmem:[#allocation3 + $0x78] sm:$0x3] %vm264_vm2, %v5079_v2  ;;  %281 = vst.msk [vmem:[#allocation3 + $0x88] sm:$0x3] %vm264_vm2, %v5079_v2 }
  0x2f   : > { %283 = vst.msk [vmem:[#allocation3 + $0x98] sm:$0x3] %vm264_vm2, %v5079_v2  ;;  %287 = vst.msk [vmem:[#allocation3 + $0xb8] sm:$0x3] %vm264_vm2, %v5079_v2 }
  0x30   : > { %289 = vst.msk [vmem:[#allocation3 + $0xc8] sm:$0x3] %vm264_vm2, %v5079_v2  ;;  %291 = vst.msk [vmem:[#allocation3 + $0xd8] sm:$0x3] %vm264_vm2, %v5079_v2  ;;  %v1281_v59 = vld [vmem:[#allocation2 + $0x81] sm:$0xff] }
  0x31   : > { %293 = vst.msk [vmem:[#allocation3 + $0xe8] sm:$0x3] %vm264_vm2, %v5079_v2  ;;  %295 = vst.msk [vmem:[#allocation3 + $0xf8] sm:$0x3] %vm264_vm2, %v5079_v2  ;;  %v345_v14 = vld [vmem:[#allocation2 + $0x10] sm:$0xff]  ;;  %v348_v15 = vld [vmem:[#allocation2 + $0x40] sm:$0xff] }
  0x32   : > { %297 = vst.msk [vmem:[#allocation3 + $0x108] sm:$0x3] %vm264_vm2, %v5079_v2  ;;  %299 = vst.msk [vmem:[#allocation3 + $0x118] sm:$0x3] %vm264_vm2, %v5079_v2  ;;  %v5334_v16 = vpack.c.bf16 %v345_v14, %v344_v13  ;;  %v5350_v28 = vld [vmem:[#allocation2 + $0x11] sm:$0xff]  ;;  %v5361_v32 = vld [vmem:[#allocation2 + $0x41] sm:$0xff] }
  0x33   : > { %301 = vst.msk [vmem:[#allocation3 + $0x128] sm:$0x3] %vm264_vm2, %v5079_v2  ;;  %303 = vst.msk [vmem:[#allocation3 + $0x138] sm:$0x3] %vm264_vm2, %v5079_v2  ;;  %v498_v31 = vpack.c.bf16 %v5350_v28, %v490_v26 }
  0x34   : > { %305 = vst.msk [vmem:[#allocation3 + $0x148] sm:$0x3] %vm264_vm2, %v5079_v2  ;;  %307 = vst.msk [vmem:[#allocation3 + $0x158] sm:$0x3] %vm264_vm2, %v5079_v2  ;;  %4298 = vmatprep.mubr.msk.bf16.mxu0 %vm226_vm0, %v5334_v16 }
  0x35   : > { %309 = vst.msk [vmem:[#allocation3 + $0x168] sm:$0x3] %vm264_vm2, %v5079_v2  ;;  %311 = vst.msk [vmem:[#allocation3 + $0x178] sm:$0x3] %vm264_vm2, %v5079_v2 }
  0x36   : > { %313 = vst.msk [vmem:[#allocation3 + $0x188] sm:$0x3] %vm264_vm2, %v5079_v2  ;;  %315 = vst.msk [vmem:[#allocation3 + $0x198] sm:$0x3] %vm264_vm2, %v5079_v2 }
  0x37   : > { %317 = vst.msk [vmem:[#allocation3 + $0x1a8] sm:$0x3] %vm264_vm2, %v5079_v2  ;;  %319 = vst.msk [vmem:[#allocation3 + $0x1b8] sm:$0x3] %vm264_vm2, %v5079_v2 }
  0x38   : > { %321 = vst.msk [vmem:[#allocation3 + $0x1c8] sm:$0x3] %vm264_vm2, %v5079_v2  ;;  %325 = vst.msk [vmem:[#allocation3 + $0x1e8] sm:$0x3] %vm264_vm2, %v5079_v2 }
  0x39   : > { %327 = vst.msk [vmem:[#allocation3 + $0x1f8] sm:$0x3] %vm264_vm2, %v5079_v2  ;;  %329 = vst.msk [vmem:[#allocation3 + $0x208] sm:$0x3] %vm264_vm2, %v5079_v2 }
  0x3a   : > { %331 = vst.msk [vmem:[#allocation3 + $0x218] sm:$0x3] %vm264_vm2, %v5079_v2  ;;  %333 = vst.msk [vmem:[#allocation3 + $0x228] sm:$0x3] %vm264_vm2, %v5079_v2 }
  0x3b   : > { %335 = vst.msk [vmem:[#allocation3 + $0x238] sm:$0x3] %vm264_vm2, %v5079_v2  ;;  %337 = vst.msk [vmem:[#allocation3 + $0x248] sm:$0x3] %vm264_vm2, %v5079_v2 }
  0x3c   : > { %339 = vst.msk [vmem:[#allocation3 + $0x258] sm:$0x3] %vm264_vm2, %v5079_v2  ;;  %341 = vst.msk [vmem:[#allocation3 + $0x268] sm:$0x3] %vm264_vm2, %v5079_v2  ;;  %v5507_v2 = vld [vmem:[%s6248_s3] sm:$0xff]  }
  0x3d   : > { %259 = vst.msk [vmem:[#allocation2 + $0x50] sm:$0xff] %vm226_vm0, %v251_v7  ;;  %256 = vst.msk [vmem:[#allocation2 + $0x20] sm:$0xff] %vm226_vm0, %v248_v8 }
  0x3e   : > { %257 = vst.msk [vmem:[#allocation2 + $0x30] sm:$0xff] %vm226_vm0, %v249_v9  ;;  %260 = vst.msk [vmem:[#allocation2 + $0x60] sm:$0xff] %vm226_vm0, %v252_v10 }
  0x3f   : > { %261 = vst.msk [vmem:[#allocation2 + $0x70] sm:$0xff] %vm226_vm0, %v253_v11 }
  0x44   : > { %v349_v17 = vld [vmem:[#allocation2 + $0x50] sm:$0xff]  ;;  %v346_v18 = vld [vmem:[#allocation2 + $0x20] sm:$0xff] }
  0x45   : > { %v347_v19 = vld [vmem:[#allocation2 + $0x30] sm:$0xff]  ;;  %v5342_v22 = vpack.c.bf16 %v349_v17, %v348_v15  ;;  %v350_v24 = vld [vmem:[#allocation2 + $0x60] sm:$0xff]  ;;  %v5367_v35 = vpack.c.bf16 %v346_v18, %v345_v14 }
  0x46   : > { %v5344_v23 = vpack.c.bf16 %v347_v19, %v346_v18  ;;  %v351_v25 = vld [vmem:[#allocation2 + $0x70] sm:$0xff]  ;;  %v5352_v29 = vld [vmem:[#allocation2 + $0x21] sm:$0xff]  ;;  %v5387_v41 = vpack.c.bf16 %v348_v15, %v347_v19  ;;  %v5391_v43 = vpack.c.bf16 %v350_v24, %v349_v17 }
  0x47   : > { %v5348_v27 = vpack.c.bf16 %v351_v25, %v350_v24  ;;  %v5354_v30 = vld [vmem:[#allocation2 + $0x31] sm:$0xff]  ;;  %4302 = vmatprep.mubr.msk.bf16.mxu1 %vm226_vm0, %v5342_v22  ;;  %v5365_v34 = vld [vmem:[#allocation2 + $0x61] sm:$0xff]  ;;  %v1282_v36 = vpack.c.bf16 %v5352_v29, %v5350_v28  ;;  %v739_v50 = vpack.c.bf16 %v735_v46, %v351_v25 }
  0x48   : > { %4299 = vmatmul.mubr.msk.bf16.vlgmr.msra.gmra.mrb[0].mxu0 %vm226_vm0, %v5344_v23  ;;  %v5363_v33 = vld [vmem:[#allocation2 + $0x51] sm:$0xff]  ;;  %v1283_v37 = vpack.c.bf16 %v5361_v32, %v5354_v30  ;;  %v499_v42 = vpack.c.bf16 %v5354_v30, %v5352_v29 }
  0x49   : > { %4303 = vmatmul.mubr.msk.bf16.vlgmr.msra.gmra.mrb[0].mxu1 %vm226_vm0, %v5348_v27  ;;  %4331 = vmatpush3.bf16.msra.mxu0 %v5041_v12  ;;  %v1284_v38 = vpack.c.bf16 %v5365_v34, %v5363_v33  ;;  %v500_v44 = vpack.c.bf16 %v5363_v33, %v5361_v32  ;;  %v5398_v47 = vld [vmem:[#allocation2 + $0x71] sm:$0xff] }
  0x4a   : > { %4307 = vmatpush3.bf16.msra.mxu1 %v5224_v3  ;;  %4310 = vmatprep.mubr.msk.bf16.mxu1 %vm226_vm0, %v498_v31  ;;  %v501_v51 = vpack.c.bf16 %v5398_v47, %v5365_v34  ;;  %v1285_v62 = vpack.c.bf16 %v1281_v59, %v5398_v47  ;;  %v5513_v3 = vld [vmem:[%s6247_s2] ss:$0 sm:$0xff] }
  0x4b   : > { %4308 = vmatprep.subr.bf16.mxu1 %v5038_v20  ;;  %4332 = vmatprep.subr.bf16.mxu0 %v5043_v21 }
  0x4c   : > { %4334 = vmatprep.mubr.msk.bf16.mxu0 %vm226_vm0, %v5367_v35 }
  0x4d   : > { %4333 = vmatpush3.bf16.msra.mxu0 %v5043_v21 }
  0x4e   : > { %4309 = vmatpush3.bf16.msra.mxu1 %v5038_v20  ;;  %4342 = vmatprep.subr.bf16.mxu0 %v5045_v39 }
  0x4f   : > { %4318 = vmatprep.subr.bf16.mxu1 %v5039_v40 }
  0x50   : > { %4335 = vmatmul.mubr.msk.bf16.vlgmr.msra.gmra.mrb[4].mxu0 %vm226_vm0, %v5387_v41 }
  0x51   : > { %4311 = vmatmul.mubr.msk.bf16.vlgmr.msra.gmra.mrb[4].mxu1 %vm226_vm0, %v499_v42  ;;  %4338 = vmatprep.mubr.msk.bf16.mxu0 %vm226_vm0, %v5391_v43 }
  0x52   : > { %4319 = vmatpush3.bf16.msra.mxu1 %v5039_v40  ;;  %4314 = vmatprep.mubr.msk.bf16.mxu1 %vm226_vm0, %v500_v44 }
  0x53   : > { %4320 = vmatprep.subr.bf16.mxu1 %v5040_v45  ;;  %4343 = vmatpush3.bf16.msra.mxu0 %v5045_v39 }
  0x54   : > { %4344 = vmatprep.subr.bf16.mxu0 %v5047_v48 }
  0x56   : > { %4321 = vmatpush3.bf16.msra.mxu1 %v5040_v45 }
  0x57   : > { %4354 = vmatprep.subr.bf16.mxu1 %v5042_v49  ;;  %4345 = vmatpush3.bf16.msra.mxu0 %v5047_v48 }
  0x58   : > { %4339 = vmatmul.mubr.msk.bf16.gmra.mrb[8].mxu0 %vm226_vm0, %v739_v50  ;;  %4546 = vmatprep.subr.bf16.mxu0 %v5053_v60 }
  0x59   : > { %4315 = vmatmul.mubr.msk.bf16.gmra.mrb[8].mxu1 %vm226_vm0, %v501_v51  ;;  %4346 = vmatprep.mubr.msk.bf16.mxu0 %vm226_vm0, %v5334_v16 }
  0x5a   : > { %4322 = vmatprep.mubr.msk.bf16.mxu1 %vm226_vm0, %v5334_v16 }
  0x60   : > { %4347 = vmatmul.mubr.msk.bf16.vlgmr.msra.gmra.mrb[4].mxu0 %vm226_vm0, %v5344_v23 }
  0x61   : > { %4323 = vmatmul.mubr.msk.bf16.vlgmr.msra.gmra.mrb[4].mxu1 %vm226_vm0, %v5344_v23  ;;  %4350 = vmatprep.mubr.msk.bf16.mxu0 %vm226_vm0, %v5342_v22 }
  0x62   : > { %4355 = vmatpush3.bf16.msra.mxu1 %v5042_v49  ;;  %4326 = vmatprep.mubr.msk.bf16.mxu1 %vm226_vm0, %v5342_v22 }
  0x63   : > { %4356 = vmatprep.subr.bf16.mxu1 %v5044_v52  ;;  %4547 = vmatpush3.bf16.msra.mxu0 %v5053_v60 }
  0x64   : > { %4548 = vmatprep.subr.bf16.mxu0 %v5054_v61 }
  0x66   : > { %4357 = vmatpush3.bf16.msra.mxu1 %v5044_v52 }
  0x67   : > { %4366 = vmatprep.subr.bf16.mxu1 %v5046_v53  ;;  %4549 = vmatpush3.bf16.msra.mxu0 %v5054_v61 }
  0x68   : > { %4351 = vmatmul.mubr.msk.bf16.gmra.mrb[8].mxu0 %vm226_vm0, %v5348_v27  ;;  %4582 = vmatprep.subr.bf16.mxu0 %v5495_v63 }
  0x69   : > { %4327 = vmatmul.mubr.msk.bf16.gmra.mrb[8].mxu1 %vm226_vm0, %v5348_v27 }
  0x6a   : > { %4358 = vmatprep.mubr.msk.bf16.mxu1 %vm226_vm0, %v498_v31 }
  0x71   : > { %4359 = vmatmul.mubr.msk.bf16.vlgmr.msra.gmra.mrb[12].mxu1 %vm226_vm0, %v499_v42 }
  0x72   : > { %4367 = vmatpush3.bf16.msra.mxu1 %v5046_v53  ;;  %4362 = vmatprep.mubr.msk.bf16.mxu1 %vm226_vm0, %v500_v44  ;;  %v5058_v44 = vld [vmem:[%s6248_s3 + $0x58] sm:$0xff]  }
  0x73   : > { %4368 = vmatprep.subr.bf16.mxu1 %v5048_v54 }
  0x76   : > { %4369 = vmatpush3.bf16.msra.mxu1 %v5048_v54 }
  0x77   : > { %4378 = vmatprep.subr.bf16.mxu1 %v5049_v55 }
  0x79   : > { %4363 = vmatmul.mubr.msk.bf16.gmra.mrb[16].mxu1 %vm226_vm0, %v501_v51  ;;  %v5574_v51 = vld [vmem:[%s6248_s3 + $0x60] sm:$0xff]  }
  0x7a   : > { %4370 = vmatprep.mubr.msk.bf16.mxu1 %vm226_vm0, %v5334_v16 }
  0x81   : > { %4371 = vmatmul.mubr.msk.bf16.vlgmr.msra.gmra.mrb[12].mxu1 %vm226_vm0, %v5344_v23 }
  0x82   : > { %4379 = vmatpush3.bf16.msra.mxu1 %v5049_v55  ;;  %4374 = vmatprep.mubr.msk.bf16.mxu1 %vm226_vm0, %v5342_v22 }
  0x83   : > { %4380 = vmatprep.subr.bf16.mxu1 %v5050_v56 }
  0x86   : > { %4381 = vmatpush3.bf16.msra.mxu1 %v5050_v56 }
  0x87   : > { %4390 = vmatprep.subr.bf16.mxu1 %v5051_v57 }
  0x89   : > { %4375 = vmatmul.mubr.msk.bf16.gmra.mrb[16].mxu1 %vm226_vm0, %v5348_v27 }
  0x8a   : > { %4382 = vmatprep.mubr.msk.bf16.mxu1 %vm226_vm0, %v5367_v35 }
  0x91   : > { %4383 = vmatmul.mubr.msk.bf16.vlgmr.msra.gmra.mrb[12].mxu1 %vm226_vm0, %v5387_v41 }
  0x92   : > { %4391 = vmatpush3.bf16.msra.mxu1 %v5051_v57  ;;  %4386 = vmatprep.mubr.msk.bf16.mxu1 %vm226_vm0, %v5391_v43 }
  0x93   : > { %4392 = vmatprep.subr.bf16.mxu1 %v5052_v58 }
  0x96   : > { %4393 = vmatpush3.bf16.msra.mxu1 %v5052_v58 }
  0x97   : > { %4402 = vmatprep.subr.bf16.mxu1 %v5056_v0 }
  0x99   : > { %4387 = vmatmul.mubr.msk.bf16.gmra.mrb[16].mxu1 %vm226_vm0, %v739_v50 }
  0x9a   : > { %4394 = vmatprep.mubr.msk.bf16.mxu1 %vm226_vm0, %v1282_v36 }
  0xa1   : > { %4395 = vmatmul.mubr.msk.bf16.vlgmr.msra.gmra.mrb[12].mxu1 %vm226_vm0, %v1283_v37 }
  0xa2   : > { %4398 = vmatprep.mubr.msk.bf16.mxu1 %vm226_vm0, %v1284_v38  ;;  %4403 = vmatpush3.bf16.msra.mxu1 %v5056_v0 }
  0xa3   : > { %4404 = vmatprep.subr.bf16.mxu1 %v5057_v1 }
  0xa6   : > { %4405 = vmatpush3.bf16.msra.mxu1 %v5057_v1 }
  0xa7   : > { %4438 = vmatprep.subr.bf16.mxu1 %v5507_v2 }
  0xa9   : > { %4399 = vmatmul.mubr.msk.bf16.gmra.mrb[16].mxu1 %vm226_vm0, %v1285_v62 }
 0x11b   : > { %v4300_v4 = vpop.f32.mrb[0].mxu0 }
 0x11c   : > { %v434_v5 = vadd.f32 %v4300_v4, %v5513_v3  ;;  %v4304_v6 = vpop.f32.mrb[0].mxu1  ;;  %v425_v7 = vpop.f32.mrb[1].mxu0 }
 0x11d   : > { %v450_v8 = vadd.f32 %v4304_v6, %v5513_v3  ;;  %v426_v9 = vadd.f32 %v5513_v3, %v425_v7  ;;  %v441_v10 = vpop.f32.mrb[1].mxu1  ;;  %v4301_v11 = vpop.f32.mrb[2].mxu0 }
 0x11e   : > { %v458_v12 = vmax.f32 %v434_v5, 0.0  ;;  %v442_v13 = vadd.f32 %v5513_v3, %v441_v10  ;;  %v437_v14 = vadd.f32 %v4301_v11, %v5513_v3  ;;  %v4305_v15 = vpop.f32.mrb[2].mxu1  ;;  %v428_v16 = vpop.f32.mrb[3].mxu0 }
 0x11f   : > { %v462_v17 = vmax.f32 %v450_v8, 0.0  ;;  %v456_v18 = vmax.f32 %v426_v9, 0.0  ;;  %v453_v19 = vadd.f32 %v4305_v15, %v5513_v3  ;;  %v429_v20 = vadd.f32 %v5513_v3, %v428_v16  ;;  %v444_v21 = vpop.f32.mrb[3].mxu1 }
 0x120   : > { %467 = vst.msk [vmem:[#allocation3 + $0x31] sm:$0xff] %vm226_vm0, %v458_v12  ;;  %v460_v22 = vmax.f32 %v442_v13, 0.0  ;;  %v459_v23 = vmax.f32 %v437_v14, 0.0  ;;  %v445_v24 = vadd.f32 %v5513_v3, %v444_v21 }
 0x121   : > { %471 = vst.msk [vmem:[#allocation3 + $0x71] sm:$0xff] %vm226_vm0, %v462_v17  ;;  %465 = vst.msk [vmem:[#allocation3 + $0x11] sm:$0xff] %vm226_vm0, %v456_v18  ;;  %v463_v25 = vmax.f32 %v453_v19, 0.0  ;;  %v457_v26 = vmax.f32 %v429_v20, 0.0 }
 0x122   : > { %469 = vst.msk [vmem:[#allocation3 + $0x51] sm:$0xff] %vm226_vm0, %v460_v22  ;;  %468 = vst.msk [vmem:[#allocation3 + $0x41] sm:$0xff] %vm226_vm0, %v459_v23  ;;  %v461_v27 = vmax.f32 %v445_v24, 0.0 }
 0x123   : > { %472 = vst.msk [vmem:[#allocation3 + $0x81] sm:$0xff] %vm226_vm0, %v463_v25  ;;  %466 = vst.msk [vmem:[#allocation3 + $0x21] sm:$0xff] %vm226_vm0, %v457_v26 }
 0x124   : > { %470 = vst.msk [vmem:[#allocation3 + $0x61] sm:$0xff] %vm226_vm0, %v461_v27 }
 0x127   : > { %v1453_v28 = vld [vmem:[#allocation3 + $0x31] sm:$0xff] }
 0x128   : > { %v1451_v29 = vld [vmem:[#allocation3 + $0x11] sm:$0xff] }
 0x129   : > { %v5531_v30 = vld [vmem:[#allocation3 + $0x32] sm:$0xff]  ;;  %v1454_v31 = vld [vmem:[#allocation3 + $0x41] sm:$0xff] }
 0x12a   : > { %6258 = vst [vmem:[#allocation4_spill] sm:$0xff] %v5531_v30  ;;  %v1455_v32 = vld [vmem:[#allocation3 + $0x51] sm:$0xff]  ;;  %v1452_v34 = vld [vmem:[#allocation3 + $0x21] sm:$0xff]  ;;  %v5533_v35 = vpack.c.bf16 %v1454_v31, %v1453_v28 }
 0x12b   : > { %v1457_v33 = vld [vmem:[#allocation3 + $0x71] sm:$0xff]  ;;  %v5535_v36 = vld [vmem:[#allocation3 + $0x22] sm:$0xff]  ;;  %v5539_v38 = vpack.c.bf16 %v1455_v32, %v1454_v31  ;;  %v5541_v39 = vpack.c.bf16 %v1452_v34, %v1451_v29  ;;  %v5547_v43 = vpack.c.bf16 %v1453_v28, %v1452_v34 }
 0x12c   : > { %6259 = vst [vmem:[#allocation5_spill] sm:$0xff] %v5535_v36  ;;  %v5537_v37 = vld [vmem:[#allocation3 + $0x42] sm:$0xff]  ;;  %v5543_v41 = vld [vmem:[#allocation3 + $0x52] sm:$0xff] }
 0x12d   : > { %6260 = vst [vmem:[#allocation6_spill] sm:$0xff] %v5537_v37  ;;  %v1456_v40 = vld [vmem:[#allocation3 + $0x61] sm:$0xff]  ;;  %6261 = vst [vmem:[#allocation7_spill] sm:$0xff] %v5543_v41  ;;  %v5552_v45 = vld [vmem:[#allocation3 + $0x72] sm:$0xff]  ;;  %4550 = vmatprep.mubr.msk.bf16.mxu0 %vm226_vm0, %v5541_v39 }
 0x12e   : > { %v5545_v42 = vld [vmem:[#allocation3 + $0x62] sm:$0xff]  ;;  %6263 = vst [vmem:[#allocation9_spill] sm:$0xff] %v5552_v45  ;;  %v5554_v46 = vpack.c.bf16 %v1457_v33, %v1456_v40  ;;  %v5558_v47 = vpack.c.bf16 %v1456_v40, %v1455_v32  ;;  %4551 = vmatmul.mubr.msk.bf16.vlgmr.msra.gmra.mrb[12].mxu0 %vm226_vm0, %v5533_v35 }
 0x12f   : > { %6262 = vst [vmem:[#allocation8_spill] sm:$0xff] %v5545_v42  ;;  %4583 = vmatpush3.bf16.msra.mxu0 %v5495_v63  ;;  %v5576_v52 = vld [vmem:[#allocation3 + $0x81] sm:$0xff] }
 0x130   : > { %4554 = vmatprep.mubr.msk.bf16.mxu0 %vm226_vm0, %v5558_v47  ;;  %4584 = vmatprep.subr.bf16.mxu0 %v5058_v44  ;;  %v5579_v55 = vpack.c.bf16 %v5576_v52, %v1457_v33  ;;  %v1427_v29 = vld [vmem:[#allocation3 + $0x141] sm:$0xff] }
 0x133   : > { %v4348_v53 = vpop.f32.mrb[4].mxu0  ;;  %4585 = vmatpush3.bf16.msra.mxu0 %v5058_v44 }
 0x134   : > { %v4324_v54 = vpop.f32.mrb[4].mxu1  ;;  %v925_v56 = vadd.f32 %v4348_v53, %v5513_v3  ;;  %v892_v57 = vpop.f32.mrb[5].mxu0  ;;  %4618 = vmatprep.subr.bf16.mxu0 %v5574_v51 }
 0x135   : > { %v687_v58 = vadd.f32 %v4324_v54, %v5513_v3  ;;  %v654_v59 = vpop.f32.mrb[5].mxu1  ;;  %v923_v60 = vadd.f32 %v5513_v3, %v892_v57  ;;  %v4349_v61 = vpop.f32.mrb[6].mxu0 }
 0x136   : > { %v685_v62 = vadd.f32 %v5513_v3, %v654_v59  ;;  %v4325_v63 = vpop.f32.mrb[6].mxu1  ;;  %4555 = vmatmul.mubr.msk.bf16.gmra.mrb[16].mxu0 %vm226_vm0, %v5579_v55  ;;  %v933_v0 = vmax.f32 %v925_v56, 0.0  ;;  %v926_v1 = vadd.f32 %v4349_v61, %v5513_v3  ;;  %v895_v4 = vpop.f32.mrb[7].mxu0 }
 0x137   : > { %v695_v5 = vmax.f32 %v687_v58, 0.0  ;;  %v688_v6 = vadd.f32 %v4325_v63, %v5513_v3  ;;  %v657_v7 = vpop.f32.mrb[7].mxu1  ;;  %v931_v8 = vmax.f32 %v923_v60, 0.0  ;;  %v924_v9 = vadd.f32 %v5513_v3, %v895_v4 }
 0x138   : > { %v693_v10 = vmax.f32 %v685_v62, 0.0  ;;  %v686_v11 = vadd.f32 %v5513_v3, %v657_v7  ;;  %942 = vst.msk [vmem:[#allocation3 + $0x171] sm:$0xff] %vm226_vm0, %v933_v0  ;;  %v934_v12 = vmax.f32 %v926_v1, 0.0  ;;  %v5061_v0 = vld [vmem:[%s6248_s3 + $0x8] sm:$0xff]  }
 0x139   : > { %704 = vst.msk [vmem:[#allocation3 + $0xd1] sm:$0xff] %vm226_vm0, %v695_v5  ;;  %v696_v13 = vmax.f32 %v688_v6, 0.0  ;;  %940 = vst.msk [vmem:[#allocation3 + $0x151] sm:$0xff] %vm226_vm0, %v931_v8  ;;  %v932_v14 = vmax.f32 %v924_v9, 0.0 }
 0x13a   : > { %702 = vst.msk [vmem:[#allocation3 + $0xb1] sm:$0xff] %vm226_vm0, %v693_v10  ;;  %v694_v15 = vmax.f32 %v686_v11, 0.0  ;;  %943 = vst.msk [vmem:[#allocation3 + $0x181] sm:$0xff] %vm226_vm0, %v934_v12 }
 0x13b   : > { %705 = vst.msk [vmem:[#allocation3 + $0xe1] sm:$0xff] %vm226_vm0, %v696_v13  ;;  %941 = vst.msk [vmem:[#allocation3 + $0x161] sm:$0xff] %vm226_vm0, %v932_v14  ;;  %v4352_v16 = vpop.f32.mrb[8].mxu0 }
 0x13c   : > { %703 = vst.msk [vmem:[#allocation3 + $0xc1] sm:$0xff] %vm226_vm0, %v694_v15  ;;  %v4328_v17 = vpop.f32.mrb[8].mxu1  ;;  %v929_v18 = vadd.f32 %v4352_v16, %v5513_v3  ;;  %v908_v19 = vpop.f32.mrb[9].mxu0 }
 0x13d   : > { %v691_v20 = vadd.f32 %v4328_v17, %v5513_v3  ;;  %v670_v21 = vpop.f32.mrb[9].mxu1  ;;  %v927_v22 = vadd.f32 %v5513_v3, %v908_v19  ;;  %v4353_v23 = vpop.f32.mrb[10].mxu0 }
 0x13e   : > { %v689_v24 = vadd.f32 %v5513_v3, %v670_v21  ;;  %v4329_v25 = vpop.f32.mrb[10].mxu1  ;;  %v937_v26 = vmax.f32 %v929_v18, 0.0  ;;  %v930_v27 = vadd.f32 %v4353_v23, %v5513_v3  ;;  %v911_v28 = vpop.f32.mrb[11].mxu0 }
 0x13f   : > { %v699_v31 = vmax.f32 %v691_v20, 0.0  ;;  %v692_v32 = vadd.f32 %v4329_v25, %v5513_v3  ;;  %v673_v33 = vpop.f32.mrb[11].mxu1  ;;  %v935_v34 = vmax.f32 %v927_v22, 0.0  ;;  %v928_v40 = vadd.f32 %v5513_v3, %v911_v28  ;;  %v1430_v57 = vld [vmem:[#allocation3 + $0x171] sm:$0xff] }
 0x140   : > { %v697_v44 = vmax.f32 %v689_v24, 0.0  ;;  %v690_v53 = vadd.f32 %v5513_v3, %v673_v33  ;;  %946 = vst.msk [vmem:[#allocation3 + $0x1b1] sm:$0xff] %vm226_vm0, %v937_v26  ;;  %v938_v54 = vmax.f32 %v930_v27, 0.0  ;;  %v1428_v56 = vld [vmem:[#allocation3 + $0x151] sm:$0xff] }
 0x141   : > { %708 = vst.msk [vmem:[#allocation3 + $0x111] sm:$0xff] %vm226_vm0, %v699_v31  ;;  %v700_v58 = vmax.f32 %v692_v32, 0.0  ;;  %944 = vst.msk [vmem:[#allocation3 + $0x191] sm:$0xff] %vm226_vm0, %v935_v34  ;;  %v936_v59 = vmax.f32 %v928_v40, 0.0  ;;  %v5611_v60 = vpack.c.bf16 %v1428_v56, %v1427_v29  ;;  %v1479_v1 = vld [vmem:[#allocation3 + $0xb1] sm:$0xff]  ;;  %v1431_v10 = vld [vmem:[#allocation3 + $0x181] sm:$0xff] }
 0x142   : > { %706 = vst.msk [vmem:[#allocation3 + $0xf1] sm:$0xff] %vm226_vm0, %v697_v44  ;;  %v698_v61 = vmax.f32 %v690_v53, 0.0  ;;  %v1482_v62 = vld [vmem:[#allocation3 + $0xe1] sm:$0xff]  ;;  %947 = vst.msk [vmem:[#allocation3 + $0x1c1] sm:$0xff] %vm226_vm0, %v938_v54  ;;  %v1481_v5 = vld [vmem:[#allocation3 + $0xd1] sm:$0xff]  ;;  %v5665_v24 = vpack.c.bf16 %v1431_v10, %v1430_v57 }
 0x143   : > { %v1429_v63 = vld [vmem:[#allocation3 + $0x161] sm:$0xff]  ;;  %709 = vst.msk [vmem:[#allocation3 + $0x121] sm:$0xff] %vm226_vm0, %v700_v58  ;;  %945 = vst.msk [vmem:[#allocation3 + $0x1a1] sm:$0xff] %vm226_vm0, %v936_v59  ;;  %4406 = vmatprep.mubr.msk.bf16.mxu1 %vm226_vm0, %v5611_v60  ;;  %v5629_v9 = vpack.c.bf16 %v1482_v62, %v1481_v5  ;;  %v5672_v26 = vld [vmem:[%s6248_s3 + $0x20] sm:$0xff]  }
 0x144   : > { %v1480_v4 = vld [vmem:[#allocation3 + $0xc1] sm:$0xff]  ;;  %v5622_v6 = vpack.c.bf16 %v1430_v57, %v1429_v63  ;;  %707 = vst.msk [vmem:[#allocation3 + $0x101] sm:$0xff] %vm226_vm0, %v698_v61  ;;  %v5650_v21 = vpack.c.bf16 %v1429_v63, %v1428_v56  ;;  %v1439_v48 = vld [vmem:[#allocation3 + $0xb0] sm:$0xff] }
 0x145   : > { %v5625_v7 = vpack.c.bf16 %v1480_v4, %v1479_v1  ;;  %v5627_v8 = vpack.c.bf16 %v1481_v5, %v1480_v4 }
 0x146   : > { %4407 = vmatmul.mubr.msk.bf16.vlgmr.msra.gmra.mrb[20].mxu1 %vm226_vm0, %v5622_v6 }
 0x147   : > { %4558 = vmatprep.mubr.msk.bf16.mxu0 %vm226_vm0, %v5625_v7  ;;  %4439 = vmatpush3.bf16.msra.mxu1 %v5507_v2  ;;  %v1434_v12 = vld [vmem:[#allocation3 + $0x1b1] sm:$0xff] }
 0x148   : > { %4559 = vmatmul.mubr.msk.bf16.gmra.mrb[20].mxu0 %vm226_vm0, %v5629_v9  ;;  %4440 = vmatprep.subr.bf16.mxu1 %v5061_v0  ;;  %v1432_v11 = vld [vmem:[#allocation3 + $0x191] sm:$0xff] }
 0x149   : > { %v1483_v13 = vld [vmem:[#allocation3 + $0xf1] sm:$0xff]  ;;  %v5638_v14 = vpack.c.bf16 %v1432_v11, %v1431_v10  ;;  %v2191_v27 = vld [vmem:[#allocation3 + $0x1c1] sm:$0xff] }
 0x14a   : > { %v5640_v15 = vld [vmem:[#allocation3 + $0x121] sm:$0xff]  ;;  %v5642_v17 = vpack.c.bf16 %v1483_v13, %v1482_v62  ;;  %v1485_v20 = vld [vmem:[#allocation3 + $0x111] sm:$0xff]  ;;  %v5679_v28 = vpack.c.bf16 %v2191_v27, %v1434_v12 }
 0x14b   : > { %v2189_v16 = vld [vmem:[#allocation3 + $0x1a1] sm:$0xff]  ;;  %4441 = vmatpush3.bf16.msra.mxu1 %v5061_v0  ;;  %4410 = vmatprep.mubr.msk.bf16.mxu1 %vm226_vm0, %v5638_v14  ;;  %v5653_v22 = vpack.c.bf16 %v5640_v15, %v1485_v20  ;;  %v5848_v50 = vld [vmem:[#allocation3 + $0x1b2] sm:$0xff] }
 0x14c   : > { %v1484_v18 = vld [vmem:[#allocation3 + $0x101] sm:$0xff]  ;;  %v5646_v2 = vpack.c.bf16 %v1434_v12, %v2189_v16  ;;  %v5667_v25 = vpack.c.bf16 %v2189_v16, %v1432_v11  ;;  %4474 = vmatprep.subr.bf16.mxu1 %v5672_v26 }
 0x14d   : > { %v5648_v19 = vpack.c.bf16 %v1484_v18, %v1483_v13  ;;  %v5657_v23 = vpack.c.bf16 %v1485_v20, %v1484_v18  ;;  %v1467_v10 = vld [vmem:[#allocation3 + $0x1e1] sm:$0xff] }
 0x14e   : > { %4411 = vmatmul.mubr.msk.bf16.gmra.mrb[24].mxu1 %vm226_vm0, %v5646_v2  ;;  %v2671_v49 = vld [vmem:[#allocation3 + $0x1c2] sm:$0xff] }
 0x14f   : > { %4562 = vmatprep.mubr.msk.bf16.mxu0 %vm226_vm0, %v5648_v19 }
 0x150   : > { %4563 = vmatmul.mubr.msk.bf16.gmra.mrb[24].mxu0 %vm226_vm0, %v5653_v22 }
 0x151   : > { %4566 = vmatprep.mubr.msk.bf16.mxu0 %vm226_vm0, %v5650_v21 }
 0x158   : > { %4567 = vmatmul.mubr.msk.bf16.gmra.mrb[28].mxu0 %vm226_vm0, %v5665_v24 }
 0x159   : > { %4570 = vmatprep.mubr.msk.bf16.mxu0 %vm226_vm0, %v5667_v25 }
 0x160   : > { %4571 = vmatmul.mubr.msk.bf16.gmra.mrb[32].mxu0 %vm226_vm0, %v5679_v28 }
 0x174   : > { %v4396_v29 = vpop.f32.mrb[12].mxu1 }
 0x175   : > { %v1389_v31 = vadd.f32 %v4396_v29, %v5513_v3  ;;  %v1348_v32 = vpop.f32.mrb[13].mxu1 }
 0x176   : > { %v1387_v33 = vadd.f32 %v5513_v3, %v1348_v32  ;;  %v4397_v34 = vpop.f32.mrb[14].mxu1 }
 0x177   : > { %v1397_v40 = vmax.f32 %v1389_v31, 0.0  ;;  %v1390_v44 = vadd.f32 %v4397_v34, %v5513_v3  ;;  %v1351_v53 = vpop.f32.mrb[15].mxu1 }
 0x178   : > { %v1395_v54 = vmax.f32 %v1387_v33, 0.0  ;;  %v1388_v56 = vadd.f32 %v5513_v3, %v1351_v53 }
 0x179   : > { %1406 = vst.msk [vmem:[#allocation3 + $0x211] sm:$0xff] %vm226_vm0, %v1397_v40  ;;  %v1398_v57 = vmax.f32 %v1390_v44, 0.0 }
 0x17a   : > { %1404 = vst.msk [vmem:[#allocation3 + $0x1f1] sm:$0xff] %vm226_vm0, %v1395_v54  ;;  %v1396_v58 = vmax.f32 %v1388_v56, 0.0 }
 0x17b   : > { %1407 = vst.msk [vmem:[#allocation3 + $0x221] sm:$0xff] %vm226_vm0, %v1398_v57 }
 0x17c   : > { %1405 = vst.msk [vmem:[#allocation3 + $0x201] sm:$0xff] %vm226_vm0, %v1396_v58  ;;  %v4400_v59 = vpop.f32.mrb[16].mxu1 }
 0x17d   : > { %v1393_v61 = vadd.f32 %v4400_v59, %v5513_v3  ;;  %v1364_v62 = vpop.f32.mrb[17].mxu1  ;;  %v5062_v59 = vld [vmem:[%s6248_s3 + $0x68] sm:$0xff]  }
 0x17e   : > { %v1391_v63 = vadd.f32 %v5513_v3, %v1364_v62  ;;  %v4401_v0 = vpop.f32.mrb[18].mxu1  ;;  %v1926_v62 = vld [vmem:[#allocation3 + $0x12] sm:$0xff] }
 0x17f   : > { %v1401_v1 = vmax.f32 %v1393_v61, 0.0  ;;  %v1394_v4 = vadd.f32 %v4401_v0, %v5513_v3  ;;  %v1367_v5 = vpop.f32.mrb[19].mxu1  ;;  %v5750_v61 = vld [vmem:[%s6248_s3 + $0x70] sm:$0xff]   ;;  %v5772_v0 = vpack.c.bf16 %v5545_v42, %v5543_v41 }
 0x180   : > { %v1399_v11 = vmax.f32 %v1391_v63, 0.0  ;;  %v1392_v12 = vadd.f32 %v5513_v3, %v1367_v5  ;;  %v1470_v31 = vld [vmem:[#allocation3 + $0x211] sm:$0xff]  ;;  %v5756_v63 = vpack.c.bf16 %v5535_v36, %v1926_v62  ;;  %v5780_v5 = vld [vmem:[#allocation3 + $0x82] sm:$0xff] }
 0x181   : > { %1410 = vst.msk [vmem:[#allocation3 + $0x251] sm:$0xff] %vm226_vm0, %v1401_v1  ;;  %v1402_v13 = vmax.f32 %v1394_v4, 0.0  ;;  %v1468_v16 = vld [vmem:[#allocation3 + $0x1f1] sm:$0xff]  ;;  %v1414_v1 = vld [vmem:[#allocation3 + $0x1e0] sm:$0xff]  ;;  %6264 = vst [vmem:[#allocation10_spill] sm:$0xff] %v5780_v5 }
 0x182   : > { %1408 = vst.msk [vmem:[#allocation3 + $0x231] sm:$0xff] %vm226_vm0, %v1399_v11  ;;  %v1400_v18 = vmax.f32 %v1392_v12, 0.0  ;;  %v5697_v20 = vpack.c.bf16 %v1468_v16, %v1467_v10  ;;  %v2433_v27 = vld [vmem:[#allocation3 + $0x221] sm:$0xff]  ;;  %v1415_v4 = vld [vmem:[#allocation3 + $0x1f0] sm:$0xff]  ;;  %v5784_v11 = vpack.c.bf16 %v5780_v5, %v5552_v45 }
 0x183   : > { %1411 = vst.msk [vmem:[#allocation3 + $0x261] sm:$0xff] %vm226_vm0, %v1402_v13  ;;  %v1469_v29 = vld [vmem:[#allocation3 + $0x201] sm:$0xff]  ;;  %v5707_v33 = vpack.c.bf16 %v2433_v27, %v1470_v31  ;;  %v1422_v10 = vpack.c.bf16 %v1415_v4, %v1414_v1  ;;  %v5824_v1 = vld [vmem:[#allocation3 + $0x172] sm:$0xff] }
 0x184   : > { %1409 = vst.msk [vmem:[#allocation3 + $0x241] sm:$0xff] %vm226_vm0, %v1400_v18  ;;  %4414 = vmatprep.mubr.msk.bf16.mxu1 %vm226_vm0, %v5697_v20  ;;  %v5703_v3 = vpack.c.bf16 %v1470_v31, %v1469_v29  ;;  %v5705_v32 = vpack.c.bf16 %v1469_v29, %v1468_v16  ;;  %v1416_v12 = vld [vmem:[#allocation3 + $0x200] sm:$0xff]  ;;  %v1417_v16 = vld [vmem:[#allocation3 + $0x210] sm:$0xff]  ;;  %v5065_v31 = vld [vmem:[%s6248_s3 + $0x28] sm:$0xff]  }
 0x185   : > { %v1423_v18 = vpack.c.bf16 %v1417_v16, %v1416_v12  ;;  %v1442_v42 = vld [vmem:[#allocation3 + $0xe0] sm:$0xff]  ;;  %v1441_v45 = vld [vmem:[#allocation3 + $0xd0] sm:$0xff] }
 0x186   : > { %4415 = vmatmul.mubr.msk.bf16.gmra.mrb[28].mxu1 %vm226_vm0, %v5703_v3  ;;  %4574 = vmatprep.mubr.msk.bf16.mxu0 %vm226_vm0, %v5705_v32 }
 0x187   : > { %4575 = vmatmul.mubr.msk.bf16.gmra.mrb[36].mxu0 %vm226_vm0, %v5707_v33 }
 0x188   : > { %v1474_v54 = vld [vmem:[#allocation3 + $0x251] sm:$0xff] }
 0x189   : > { %v1472_v34 = vld [vmem:[#allocation3 + $0x231] sm:$0xff] }
 0x18a   : > { %v5715_v40 = vpack.c.bf16 %v1472_v34, %v2433_v27  ;;  %v2437_v44 = vld [vmem:[#allocation3 + $0x261] sm:$0xff]  ;;  %v1419_v13 = vld [vmem:[#allocation3 + $0x230] sm:$0xff] }
 0x18b   : > { %v1473_v53 = vld [vmem:[#allocation3 + $0x241] sm:$0xff]  ;;  %v5723_v58 = vpack.c.bf16 %v2437_v44, %v1474_v54 }
 0x18c   : > { %4418 = vmatprep.mubr.msk.bf16.mxu1 %vm226_vm0, %v5715_v40  ;;  %v5719_v56 = vpack.c.bf16 %v1474_v54, %v1473_v53  ;;  %v5721_v57 = vpack.c.bf16 %v1473_v53, %v1472_v34  ;;  %v1418_v27 = vld [vmem:[#allocation3 + $0x220] sm:$0xff]  ;;  %v1421_v53 = vld [vmem:[#allocation3 + $0x250] sm:$0xff] }
 0x18d   : > { %v1424_v29 = vpack.c.bf16 %v1419_v13, %v1418_v27  ;;  %v1420_v34 = vld [vmem:[#allocation3 + $0x240] sm:$0xff]  ;;  %v5808_v54 = vld [vmem:[#allocation3 + $0x152] sm:$0xff] }
 0x18e   : > { %4419 = vmatmul.mubr.msk.bf16.gmra.mrb[32].mxu1 %vm226_vm0, %v5719_v56  ;;  %4578 = vmatprep.mubr.msk.bf16.mxu0 %vm226_vm0, %v5721_v57  ;;  %v5806_v44 = vld [vmem:[%s6248_s3 + $0x30] sm:$0xff]   ;;  %v1425_v62 = vpack.c.bf16 %v1421_v53, %v1420_v34 }
 0x18f   : > { %4422 = vmatprep.mubr.msk.bf16.mxu1 %vm226_vm0, %v5541_v39  ;;  %4579 = vmatmul.mubr.msk.bf16.gmra.mrb[40].mxu0 %vm226_vm0, %v5723_v58  ;;  %v2179_v36 = vld [vmem:[#allocation3 + $0x260] sm:$0xff] }
 0x190   : > { %4586 = vmatprep.mubr.msk.bf16.mxu0 %vm226_vm0, %v5625_v7 }
 0x196   : > { %4423 = vmatmul.mubr.msk.bf16.gmra.mrb[36].mxu1 %vm226_vm0, %v5533_v35 }
 0x197   : > { %4426 = vmatprep.mubr.msk.bf16.mxu1 %vm226_vm0, %v5558_v47  ;;  %4587 = vmatmul.mubr.msk.bf16.vlgmr.msra.gmra.mrb[12].mxu0 %vm226_vm0, %v5629_v9 }
 0x198   : > { %4619 = vmatpush3.bf16.msra.mxu0 %v5574_v51  ;;  %4590 = vmatprep.mubr.msk.bf16.mxu0 %vm226_vm0, %v5648_v19  ;;  %v5766_v51 = vpack.c.bf16 %v5537_v37, %v5531_v30  ;;  %v5865_v37 = vpack.c.bf16 %v1442_v42, %v1441_v45  ;;  %v5890_v30 = vpack.c.bf16 %v2179_v36, %v1421_v53  ;;  %v5069_v53 = vld [vmem:[%s6248_s3 + $0x38] sm:$0xff]  }
 0x199   : > { %4620 = vmatprep.subr.bf16.mxu0 %v5062_v59 }
 0x19c   : > { %4621 = vmatpush3.bf16.msra.mxu0 %v5062_v59  ;;  %v5810_v59 = vld [vmem:[#allocation3 + $0x162] sm:$0xff] }
 0x19d   : > { %4654 = vmatprep.subr.bf16.mxu0 %v5750_v61 }
 0x19e   : > { %4427 = vmatmul.mubr.msk.bf16.gmra.mrb[40].mxu1 %vm226_vm0, %v5579_v55 }
 0x19f   : > { %4430 = vmatprep.mubr.msk.bf16.mxu1 %vm226_vm0, %v5625_v7  ;;  %4591 = vmatmul.mubr.msk.bf16.gmra.mrb[16].mxu0 %vm226_vm0, %v5653_v22 }
 0x1a0   : > { %4594 = vmatprep.mubr.msk.bf16.mxu0 %vm226_vm0, %v5756_v63 }
 0x1a6   : > { %4431 = vmatmul.mubr.msk.bf16.gmra.mrb[44].mxu1 %vm226_vm0, %v5629_v9 }
 0x1a7   : > { %4434 = vmatprep.mubr.msk.bf16.mxu1 %vm226_vm0, %v5648_v19  ;;  %4595 = vmatmul.mubr.msk.bf16.gmra.mrb[20].mxu0 %vm226_vm0, %v5766_v51 }
 0x1a8   : > { %4598 = vmatprep.mubr.msk.bf16.mxu0 %vm226_vm0, %v5772_v0 }
 0x1ae   : > { %4435 = vmatmul.mubr.msk.bf16.gmra.mrb[48].mxu1 %vm226_vm0, %v5653_v22 }
 0x1af   : > { %4442 = vmatprep.mubr.msk.bf16.mxu1 %vm226_vm0, %v1422_v10  ;;  %4599 = vmatmul.mubr.msk.bf16.gmra.mrb[24].mxu0 %vm226_vm0, %v5784_v11  ;;  %v5826_v10 = vld [vmem:[#allocation3 + $0x182] sm:$0xff] }
 0x1b0   : > { %4602 = vmatprep.mubr.msk.bf16.mxu0 %vm226_vm0, %v5705_v32 }
 0x1b6   : > { %4443 = vmatmul.mubr.msk.bf16.vlgmr.msra.gmra.mrb[20].mxu1 %vm226_vm0, %v1423_v18  ;;  %v5828_v18 = vld [vmem:[#allocation3 + $0x1a2] sm:$0xff] }
 0x1b7   : > { %4446 = vmatprep.mubr.msk.bf16.mxu1 %vm226_vm0, %v1424_v29  ;;  %4603 = vmatmul.mubr.msk.bf16.gmra.mrb[28].mxu0 %vm226_vm0, %v5707_v33  ;;  %v5832_v29 = vpack.c.bf16 %v5826_v10, %v5824_v1 }
 0x1b8   : > { %4606 = vmatprep.mubr.msk.bf16.mxu0 %vm226_vm0, %v5721_v57  ;;  %4475 = vmatpush3.bf16.msra.mxu1 %v5672_v26  ;;  %v5816_v26 = vpack.c.bf16 %v5810_v59, %v5808_v54 }
 0x1b9   : > { %4476 = vmatprep.subr.bf16.mxu1 %v5065_v31 }
 0x1bc   : > { %4477 = vmatpush3.bf16.msra.mxu1 %v5065_v31  ;;  %v5834_v31 = vld [vmem:[#allocation3 + $0x192] sm:$0xff] }
 0x1bd   : > { %4510 = vmatprep.subr.bf16.mxu1 %v5806_v44 }
 0x1be   : > { %4447 = vmatmul.mubr.msk.bf16.gmra.mrb[24].mxu1 %vm226_vm0, %v1425_v62  ;;  %v1440_v62 = vld [vmem:[#allocation3 + $0xc0] sm:$0xff] }
 0x1bf   : > { %4450 = vmatprep.mubr.msk.bf16.mxu1 %vm226_vm0, %v5611_v60  ;;  %4607 = vmatmul.mubr.msk.bf16.gmra.mrb[32].mxu0 %vm226_vm0, %v5723_v58  ;;  %v5840_v60 = vpack.c.bf16 %v5828_v18, %v5834_v31  ;;  %v5850_v5 = vpack.c.bf16 %v1440_v62, %v1439_v48  ;;  %v1444_v48 = vld [vmem:[#allocation3 + $0x100] sm:$0xff]  ;;  %v2907_v36 = vpack.c.bf16 %v1441_v45, %v1440_v62 }
 0x1c0   : > { %4610 = vmatprep.mubr.msk.bf16.mxu0 %vm226_vm0, %v5816_v26  ;;  %v1914_v45 = vld [vmem:[#allocation3 + $0x142] sm:$0xff] }
 0x1c6   : > { %4451 = vmatmul.mubr.msk.bf16.gmra.mrb[28].mxu1 %vm226_vm0, %v5622_v6  ;;  %v5853_v6 = vpack.c.bf16 %v2671_v49, %v5848_v50  ;;  %v1443_v49 = vld [vmem:[#allocation3 + $0xf0] sm:$0xff] }
 0x1c7   : > { %4454 = vmatprep.mubr.msk.bf16.mxu1 %vm226_vm0, %v5638_v14  ;;  %4611 = vmatmul.mubr.msk.bf16.gmra.mrb[36].mxu0 %vm226_vm0, %v5832_v29  ;;  %v5857_v14 = vpack.c.bf16 %v1416_v12, %v1415_v4  ;;  %v5867_v41 = vpack.c.bf16 %v1444_v48, %v1443_v49  ;;  %v5066_v4 = vld [vmem:[%s6248_s3 + $0x78] sm:$0xff]   ;;  %v5876_v12 = vpack.c.bf16 %v1420_v34, %v1419_v13  ;;  %v1445_v13 = vld [vmem:[#allocation3 + $0x110] sm:$0xff] }
 0x1c8   : > { %4614 = vmatprep.mubr.msk.bf16.mxu0 %vm226_vm0, %v5840_v60 }
 0x1ce   : > { %4455 = vmatmul.mubr.msk.bf16.gmra.mrb[32].mxu1 %vm226_vm0, %v5646_v2  ;;  %v5869_v2 = vpack.c.bf16 %v1418_v27, %v1417_v16  ;;  %v1446_v16 = vld [vmem:[#allocation3 + $0x120] sm:$0xff]  ;;  %v5068_v27 = vld [vmem:[%s6248_s3 + $0x80] sm:$0xff]  }
 0x1cf   : > { %4458 = vmatprep.mubr.msk.bf16.mxu1 %vm226_vm0, %v5850_v5  ;;  %4615 = vmatmul.mubr.msk.bf16.gmra.mrb[40].mxu0 %vm226_vm0, %v5853_v6  ;;  %v5888_v34 = vpack.c.bf16 %v1446_v16, %v1445_v13 }
 0x1d0   : > { %4622 = vmatprep.mubr.msk.bf16.mxu0 %vm226_vm0, %v5857_v14 }
 0x1d6   : > { %4459 = vmatmul.mubr.msk.bf16.gmra.mrb[36].mxu1 %vm226_vm0, %v5865_v37 }
 0x1d7   : > { %4462 = vmatprep.mubr.msk.bf16.mxu1 %vm226_vm0, %v5867_v41  ;;  %4623 = vmatmul.mubr.msk.bf16.vlgmr.msra.gmra.mrb[12].mxu0 %vm226_vm0, %v5869_v2 }
 0x1d8   : > { %4655 = vmatpush3.bf16.msra.mxu0 %v5750_v61  ;;  %4626 = vmatprep.mubr.msk.bf16.mxu0 %vm226_vm0, %v5876_v12  ;;  %v2908_v61 = vpack.c.bf16 %v1443_v49, %v1442_v42  ;;  %v2906_v42 = vld [vmem:[#allocation3 + $0x130] sm:$0xff] }
 0x1d9   : > { %4656 = vmatprep.subr.bf16.mxu0 %v5066_v4  ;;  %v2910_v62 = vpack.c.bf16 %v2906_v42, %v1446_v16 }
 0x1dc   : > { %4657 = vmatpush3.bf16.msra.mxu0 %v5066_v4  ;;  %v2909_v4 = vpack.c.bf16 %v1445_v13, %v1444_v48 }
 0x1dd   : > { %4690 = vmatprep.subr.bf16.mxu0 %v5068_v27 }
 0x1de   : > { %4463 = vmatmul.mubr.msk.bf16.gmra.mrb[40].mxu1 %vm226_vm0, %v5888_v34 }
 0x1df   : > { %4466 = vmatprep.mubr.msk.bf16.mxu1 %vm226_vm0, %v5541_v39  ;;  %4627 = vmatmul.mubr.msk.bf16.gmra.mrb[16].mxu0 %vm226_vm0, %v5890_v30 }
 0x1e0   : > { %4630 = vmatprep.mubr.msk.bf16.mxu0 %vm226_vm0, %v5650_v21 }
 0x1e6   : > { %4467 = vmatmul.mubr.msk.bf16.gmra.mrb[44].mxu1 %vm226_vm0, %v5533_v35 }
 0x1e7   : > { %4470 = vmatprep.mubr.msk.bf16.mxu1 %vm226_vm0, %v5558_v47  ;;  %4631 = vmatmul.mubr.msk.bf16.gmra.mrb[20].mxu0 %vm226_vm0, %v5665_v24 }
 0x1e8   : > { %4634 = vmatprep.mubr.msk.bf16.mxu0 %vm226_vm0, %v5667_v25 }
 0x1ee   : > { %4471 = vmatmul.mubr.msk.bf16.gmra.mrb[48].mxu1 %vm226_vm0, %v5579_v55 }
 0x1ef   : > { %4478 = vmatprep.mubr.msk.bf16.mxu1 %vm226_vm0, %v5697_v20  ;;  %4635 = vmatmul.mubr.msk.bf16.gmra.mrb[24].mxu0 %vm226_vm0, %v5679_v28  ;;  %v1922_v20 = vpack.c.bf16 %v5808_v54, %v1914_v45 }
 0x1f0   : > { %4638 = vmatprep.mubr.msk.bf16.mxu0 %vm226_vm0, %v2907_v36 }
 0x1f6   : > { %4479 = vmatmul.mubr.msk.bf16.vlgmr.msra.gmra.mrb[20].mxu1 %vm226_vm0, %v5703_v3  ;;  %v1923_v3 = vpack.c.bf16 %v5824_v1, %v5810_v59  ;;  %v5070_v59 = vld [vmem:[%s6248_s3 + $0x88] sm:$0xff]  }
 0x1f7   : > { %4482 = vmatprep.mubr.msk.bf16.mxu1 %vm226_vm0, %v5715_v40  ;;  %4639 = vmatmul.mubr.msk.bf16.gmra.mrb[28].mxu0 %vm226_vm0, %v2908_v61  ;;  %v1924_v40 = vpack.c.bf16 %v5834_v31, %v5826_v10 }
 0x1f8   : > { %4642 = vmatprep.mubr.msk.bf16.mxu0 %vm226_vm0, %v2909_v4  ;;  %4511 = vmatpush3.bf16.msra.mxu1 %v5806_v44  ;;  %v1925_v44 = vpack.c.bf16 %v5848_v50, %v5828_v18  ;;  %v6272_v50 = vld [vmem:[#allocation8_spill] sm:$0xff] }
 0x1f9   : > { %4512 = vmatprep.subr.bf16.mxu1 %v5069_v53 }
 0x1fc   : > { %4513 = vmatpush3.bf16.msra.mxu1 %v5069_v53 }
 0x1fe   : > { %4483 = vmatmul.mubr.msk.bf16.gmra.mrb[24].mxu1 %vm226_vm0, %v5719_v56  ;;  %v2919_v56 = vld [vmem:[#allocation3 + $0x91] sm:$0xff] }
 0x1ff   : > { %4486 = vmatprep.mubr.msk.bf16.mxu1 %vm226_vm0, %v1922_v20  ;;  %4643 = vmatmul.mubr.msk.bf16.gmra.mrb[32].mxu0 %vm226_vm0, %v2910_v62  ;;  %v2923_v54 = vpack.c.bf16 %v2919_v56, %v5576_v52 }
 0x200   : > { %4646 = vmatprep.mubr.msk.bf16.mxu0 %vm226_vm0, %v5547_v43 }
 0x206   : > { %4487 = vmatmul.mubr.msk.bf16.gmra.mrb[28].mxu1 %vm226_vm0, %v1923_v3 }
 0x207   : > { %4490 = vmatprep.mubr.msk.bf16.mxu1 %vm226_vm0, %v1924_v40  ;;  %4647 = vmatmul.mubr.msk.bf16.gmra.mrb[36].mxu0 %vm226_vm0, %v5539_v38 }
 0x208   : > { %4650 = vmatprep.mubr.msk.bf16.mxu0 %vm226_vm0, %v5554_v46 }
 0x20e   : > { %4491 = vmatmul.mubr.msk.bf16.gmra.mrb[32].mxu1 %vm226_vm0, %v1925_v44 }
 0x20f   : > { %4494 = vmatprep.mubr.msk.bf16.mxu1 %vm226_vm0, %v5625_v7  ;;  %4651 = vmatmul.mubr.msk.bf16.gmra.mrb[40].mxu0 %vm226_vm0, %v2923_v54  ;;  %v6274_v7 = vld [vmem:[#allocation10_spill] sm:$0xff] }
 0x210   : > { %4658 = vmatprep.mubr.msk.bf16.mxu0 %vm226_vm0, %v5650_v21 }
 0x216   : > { %4495 = vmatmul.mubr.msk.bf16.gmra.mrb[36].mxu1 %vm226_vm0, %v5629_v9 }
 0x217   : > { %4498 = vmatprep.mubr.msk.bf16.mxu1 %vm226_vm0, %v5648_v19  ;;  %4659 = vmatmul.mubr.msk.bf16.vlgmr.msra.gmra.mrb[12].mxu0 %vm226_vm0, %v5665_v24 }
 0x218   : > { %4691 = vmatpush3.bf16.msra.mxu0 %v5068_v27  ;;  %4662 = vmatprep.mubr.msk.bf16.mxu0 %vm226_vm0, %v5667_v25 }
 0x219   : > { %4692 = vmatprep.subr.bf16.mxu0 %v5070_v59 }
 0x21c   : > { %4693 = vmatpush3.bf16.msra.mxu0 %v5070_v59 }
 0x21e   : > { %4499 = vmatmul.mubr.msk.bf16.gmra.mrb[40].mxu1 %vm226_vm0, %v5653_v22 }
 0x21f   : > { %4502 = vmatprep.mubr.msk.bf16.mxu1 %vm226_vm0, %v5756_v63  ;;  %4663 = vmatmul.mubr.msk.bf16.gmra.mrb[16].mxu0 %vm226_vm0, %v5679_v28 }
 0x220   : > { %4666 = vmatprep.mubr.msk.bf16.mxu0 %vm226_vm0, %v5705_v32 }
 0x226   : > { %4503 = vmatmul.mubr.msk.bf16.gmra.mrb[44].mxu1 %vm226_vm0, %v5766_v51 }
 0x227   : > { %4506 = vmatprep.mubr.msk.bf16.mxu1 %vm226_vm0, %v5772_v0  ;;  %4667 = vmatmul.mubr.msk.bf16.gmra.mrb[20].mxu0 %vm226_vm0, %v5707_v33 }
 0x228   : > { %4670 = vmatprep.mubr.msk.bf16.mxu0 %vm226_vm0, %v5721_v57 }
 0x22e   : > { %4507 = vmatmul.mubr.msk.bf16.gmra.mrb[48].mxu1 %vm226_vm0, %v5784_v11  ;;  %v6087_v11 = vld [vmem:[%s6249_s4] ss:$0 sm:$0xff] }
 0x22f   : > { %4514 = vmatprep.mubr.msk.bf16.mxu1 %vm226_vm0, %v5850_v5  ;;  %4671 = vmatmul.mubr.msk.bf16.gmra.mrb[24].mxu0 %vm226_vm0, %v5723_v58 }
 0x230   : > { %4674 = vmatprep.mubr.msk.bf16.mxu0 %vm226_vm0, %v5547_v43  ;;  %v6269_v43 = vld [vmem:[#allocation6_spill] sm:$0xff] }
 0x236   : > { %4515 = vmatmul.mubr.msk.bf16.vlgmr.msra.gmra.mrb[20].mxu1 %vm226_vm0, %v5865_v37  ;;  %v3165_v37 = vld [vmem:[#allocation3 + $0x131] sm:$0xff] }
 0x237   : > { %4518 = vmatprep.mubr.msk.bf16.mxu1 %vm226_vm0, %v5867_v41  ;;  %4675 = vmatmul.mubr.msk.bf16.gmra.mrb[28].mxu0 %vm226_vm0, %v5539_v38  ;;  %v3169_v38 = vpack.c.bf16 %v3165_v37, %v5640_v15  ;;  %v6268_v41 = vld [vmem:[#allocation7_spill] sm:$0xff] }
 0x238   : > { %4678 = vmatprep.mubr.msk.bf16.mxu0 %vm226_vm0, %v5554_v46  ;;  %v6270_v46 = vpack.c.bf16 %v6268_v41, %v6269_v43 }
 0x23e   : > { %4519 = vmatmul.mubr.msk.bf16.gmra.mrb[24].mxu1 %vm226_vm0, %v5888_v34 }
 0x23f   : > { %4522 = vmatprep.mubr.msk.bf16.mxu1 %vm226_vm0, %v5541_v39  ;;  %4679 = vmatmul.mubr.msk.bf16.gmra.mrb[32].mxu0 %vm226_vm0, %v2923_v54 }
 0x240   : > { %4682 = vmatprep.mubr.msk.bf16.mxu0 %vm226_vm0, %v5627_v8 }
 0x246   : > { %4523 = vmatmul.mubr.msk.bf16.gmra.mrb[28].mxu1 %vm226_vm0, %v5533_v35  ;;  %v6266_v35 = vld [vmem:[#allocation5_spill] sm:$0xff] }
 0x247   : > { %4526 = vmatprep.mubr.msk.bf16.mxu1 %vm226_vm0, %v5558_v47  ;;  %4683 = vmatmul.mubr.msk.bf16.gmra.mrb[36].mxu0 %vm226_vm0, %v5642_v17  ;;  %v6271_v47 = vld [vmem:[#allocation9_spill] sm:$0xff] }
 0x248   : > { %4686 = vmatprep.mubr.msk.bf16.mxu0 %vm226_vm0, %v5657_v23  ;;  %v6273_v52 = vpack.c.bf16 %v6271_v47, %v6272_v50 }
 0x24e   : > { %4527 = vmatmul.mubr.msk.bf16.gmra.mrb[32].mxu1 %vm226_vm0, %v5579_v55  ;;  %v3399_v55 = vld [vmem:[#allocation3 + $0x92] sm:$0xff] }
 0x24f   : > { %4530 = vmatprep.mubr.msk.bf16.mxu1 %vm226_vm0, %v5857_v14  ;;  %4687 = vmatmul.mubr.msk.bf16.gmra.mrb[40].mxu0 %vm226_vm0, %v3169_v38 }
 0x250   : > { %4694 = vmatprep.mubr.msk.bf16.mxu0 %vm226_vm0, %v5705_v32 }
 0x256   : > { %4531 = vmatmul.mubr.msk.bf16.gmra.mrb[36].mxu1 %vm226_vm0, %v5869_v2 }
 0x257   : > { %4534 = vmatprep.mubr.msk.bf16.mxu1 %vm226_vm0, %v5876_v12  ;;  %4695 = vmatmul.mubr.msk.bf16.vlgmr.msra.gmra.mrb[12].mxu0 %vm226_vm0, %v5707_v33 }
 0x258   : > { %4698 = vmatprep.mubr.msk.bf16.mxu0 %vm226_vm0, %v5721_v57 }
 0x25e   : > { %4535 = vmatmul.mubr.msk.bf16.gmra.mrb[40].mxu1 %vm226_vm0, %v5890_v30  ;;  %v6265_v30 = vld [vmem:[#allocation4_spill] sm:$0xff] }
 0x25f   : > { %4538 = vmatprep.mubr.msk.bf16.mxu1 %vm226_vm0, %v5650_v21  ;;  %4699 = vmatmul.mubr.msk.bf16.gmra.mrb[16].mxu0 %vm226_vm0, %v5723_v58  ;;  %v6267_v39 = vpack.c.bf16 %v6265_v30, %v6266_v35 }
 0x260   : > { %4702 = vmatprep.mubr.msk.bf16.mxu0 %vm226_vm0, %v5816_v26 }
 0x266   : > { %4539 = vmatmul.mubr.msk.bf16.gmra.mrb[44].mxu1 %vm226_vm0, %v5665_v24 }
 0x267   : > { %4542 = vmatprep.mubr.msk.bf16.mxu1 %vm226_vm0, %v5667_v25  ;;  %4703 = vmatmul.mubr.msk.bf16.gmra.mrb[20].mxu0 %vm226_vm0, %v5832_v29 }
 0x268   : > { %4706 = vmatprep.mubr.msk.bf16.mxu0 %vm226_vm0, %v5840_v60 }
 0x26e   : > { %4543 = vmatmul.mubr.msk.bf16.gmra.mrb[48].mxu1 %vm226_vm0, %v5679_v28 }
 0x26f   : > { %4707 = vmatmul.mubr.msk.bf16.gmra.mrb[24].mxu0 %vm226_vm0, %v5853_v6 }
 0x270   : > { %4710 = vmatprep.mubr.msk.bf16.mxu0 %vm226_vm0, %v5627_v8  ;;  %v3403_v8 = vpack.c.bf16 %v3399_v55, %v6274_v7 }
 0x277   : > { %4711 = vmatmul.mubr.msk.bf16.gmra.mrb[28].mxu0 %vm226_vm0, %v5642_v17 }
 0x278   : > { %4714 = vmatprep.mubr.msk.bf16.mxu0 %vm226_vm0, %v5657_v23 }
 0x27f   : > { %4715 = vmatmul.mubr.msk.bf16.gmra.mrb[32].mxu0 %vm226_vm0, %v3169_v38 }
 0x280   : > { %4718 = vmatprep.mubr.msk.bf16.mxu0 %vm226_vm0, %v6267_v39 }
 0x287   : > { %4719 = vmatmul.mubr.msk.bf16.gmra.mrb[36].mxu0 %vm226_vm0, %v6270_v46 }
 0x288   : > { %4722 = vmatprep.mubr.msk.bf16.mxu0 %vm226_vm0, %v6273_v52 }
 0x28f   : > { %4723 = vmatmul.mubr.msk.bf16.gmra.mrb[40].mxu0 %vm226_vm0, %v3403_v8 }
 0x309   : > { %v4516_v9 = vpop.f32.mrb[20].mxu1 }
 0x30a   : > { %v2271_v15 = vpop.f32.mrb[21].mxu1 }
 0x30b   : > { %v4517_v17 = vpop.f32.mrb[22].mxu1 }
 0x30c   : > { %v2274_v19 = vpop.f32.mrb[23].mxu1 }
 0x311   : > { %v4520_v21 = vpop.f32.mrb[24].mxu1 }
 0x312   : > { %v2287_v22 = vpop.f32.mrb[25].mxu1 }
 0x313   : > { %v4521_v23 = vpop.f32.mrb[26].mxu1 }
 0x314   : > { %v2290_v24 = vpop.f32.mrb[27].mxu1 }
 0x319   : > { %v4524_v25 = vpop.f32.mrb[28].mxu1 }
 0x31a   : > { %v6066_v28 = vpop.f32.mrb[29].mxu1 }
 0x31b   : > { %v6068_v32 = vpop.f32.mrb[30].mxu1 }
 0x31c   : > { %v6070_v33 = vpop.f32.mrb[31].mxu1 }
 0x321   : > { %v6072_v57 = vpop.f32.mrb[32].mxu1 }
 0x322   : > { %v6074_v58 = vpop.f32.mrb[33].mxu1 }
 0x323   : > { %v6076_v63 = vpop.f32.mrb[34].mxu1 }
 0x324   : > { %v6078_v51 = vpop.f32.mrb[35].mxu1 }
 0x329   : > { %v6080_v0 = vpop.f32.mrb[36].mxu1 }
 0x32a   : > { %v6082_v5 = vpop.f32.mrb[37].mxu1  ;;  %v4696_v26 = vpop.f32.mrb[12].mxu0 }
 0x32b   : > { %v4730_v1 = vadd.f32 %v4696_v26, %v4516_v9  ;;  %v6090_v10 = vpop.f32.mrb[38].mxu1  ;;  %v3467_v18 = vpop.f32.mrb[13].mxu0 }
 0x32c   : > { %v4731_v29 = vadd.f32 %v3467_v18, %v2271_v15  ;;  %v6092_v31 = vpop.f32.mrb[39].mxu1  ;;  %v4697_v60 = vpop.f32.mrb[14].mxu0 }
 0x32d   : > { %v3634_v6 = vadd.f32 %v4730_v1, %v6087_v11  ;;  %v4732_v14 = vadd.f32 %v4697_v60, %v4517_v17  ;;  %v3470_v48 = vpop.f32.mrb[15].mxu0 }
 0x32e   : > { %v3632_v49 = vadd.f32 %v4731_v29, %v6087_v11  ;;  %v4733_v2 = vadd.f32 %v3470_v48, %v2274_v19 }
 0x32f   : > { %v3666_v12 = vmax.f32 %v3634_v6, 0.0  ;;  %v3635_v16 = vadd.f32 %v4732_v14, %v6087_v11 }
 0x330   : > { %v3664_v27 = vmax.f32 %v3632_v49, 0.0  ;;  %v3633_v13 = vadd.f32 %v4733_v2, %v6087_v11 }
 0x331   : > { %3698 = vst.msk [vmem:[%s6098_s9 + $0x10] sm:$0xff] %vm226_vm0, %v3666_v12  ;;  %v3667_v34 = vmax.f32 %v3635_v16, 0.0  ;;  %v6105_v36 = vpop.f32.mrb[40].mxu1 }
 0x332   : > { %3696 = vst.msk [vmem:[%s6098_s9] sm:$0xff] %vm226_vm0, %v3664_v27  ;;  %v3665_v61 = vmax.f32 %v3633_v13, 0.0  ;;  %v6109_v53 = vpop.f32.mrb[41].mxu1  ;;  %v4700_v4 = vpop.f32.mrb[16].mxu0 }
 0x333   : > { %3699 = vst.msk [vmem:[%s6098_s9 + $0x18] sm:$0xff] %vm226_vm0, %v3667_v34  ;;  %v4734_v45 = vadd.f32 %v4700_v4, %v4520_v21  ;;  %v6113_v42 = vpop.f32.mrb[42].mxu1  ;;  %v3483_v20 = vpop.f32.mrb[17].mxu0 }
 0x334   : > { %3697 = vst.msk [vmem:[%s6098_s9 + $0x8] sm:$0xff] %vm226_vm0, %v3665_v61  ;;  %v4735_v62 = vadd.f32 %v3483_v20, %v2287_v22  ;;  %v6117_v3 = vpop.f32.mrb[43].mxu1  ;;  %v4701_v40 = vpop.f32.mrb[18].mxu0 }
 0x335   : > { %v3638_v56 = vadd.f32 %v4734_v45, %v6087_v11  ;;  %v4736_v44 = vadd.f32 %v4701_v40, %v4521_v23  ;;  %v3486_v54 = vpop.f32.mrb[19].mxu0 }
 0x336   : > { %v3636_v59 = vadd.f32 %v4735_v62, %v6087_v11  ;;  %v4737_v37 = vadd.f32 %v3486_v54, %v2290_v24 }
 0x337   : > { %v3670_v38 = vmax.f32 %v3638_v56, 0.0  ;;  %v3639_v30 = vadd.f32 %v4736_v44, %v6087_v11 }
 0x338   : > { %v3668_v35 = vmax.f32 %v3636_v59, 0.0  ;;  %v3637_v39 = vadd.f32 %v4737_v37, %v6087_v11 }
 0x339   : > { %3702 = vst.msk [vmem:[%s6098_s9 + $0x30] sm:$0xff] %vm226_vm0, %v3670_v38  ;;  %v3671_v41 = vmax.f32 %v3639_v30, 0.0  ;;  %v6125_v43 = vpop.f32.mrb[44].mxu1 }
 0x33a   : > { %3700 = vst.msk [vmem:[%s6098_s9 + $0x20] sm:$0xff] %vm226_vm0, %v3668_v35  ;;  %v3669_v46 = vmax.f32 %v3637_v39, 0.0  ;;  %v6129_v47 = vpop.f32.mrb[45].mxu1  ;;  %v4704_v50 = vpop.f32.mrb[20].mxu0 }
 0x33b   : > { %3703 = vst.msk [vmem:[%s6098_s9 + $0x38] sm:$0xff] %vm226_vm0, %v3671_v41  ;;  %v4738_v52 = vadd.f32 %v4704_v50, %v4524_v25  ;;  %v6133_v55 = vpop.f32.mrb[46].mxu1  ;;  %v3499_v7 = vpop.f32.mrb[21].mxu0 }
 0x33c   : > { %3701 = vst.msk [vmem:[%s6098_s9 + $0x28] sm:$0xff] %vm226_vm0, %v3669_v46  ;;  %v4739_v8 = vadd.f32 %v3499_v7, %v6066_v28  ;;  %v6138_v9 = vpop.f32.mrb[47].mxu1  ;;  %v4705_v15 = vpop.f32.mrb[22].mxu0 }
 0x33d   : > { %v3642_v17 = vadd.f32 %v4738_v52, %v6087_v11  ;;  %v4740_v19 = vadd.f32 %v4705_v15, %v6068_v32  ;;  %v3502_v21 = vpop.f32.mrb[23].mxu0 }
 0x33e   : > { %v3640_v22 = vadd.f32 %v4739_v8, %v6087_v11  ;;  %v4741_v23 = vadd.f32 %v3502_v21, %v6070_v33 }
 0x33f   : > { %v3674_v24 = vmax.f32 %v3642_v17, 0.0  ;;  %v3643_v25 = vadd.f32 %v4740_v19, %v6087_v11 }
 0x340   : > { %v3672_v26 = vmax.f32 %v3640_v22, 0.0  ;;  %v3641_v28 = vadd.f32 %v4741_v23, %v6087_v11 }
 0x341   : > { %3706 = vst.msk [vmem:[%s6098_s9 + $0x50] sm:$0xff] %vm226_vm0, %v3674_v24  ;;  %v3675_v1 = vmax.f32 %v3643_v25, 0.0  ;;  %v6148_v18 = vpop.f32.mrb[48].mxu1 }
 0x342   : > { %3704 = vst.msk [vmem:[%s6098_s9 + $0x40] sm:$0xff] %vm226_vm0, %v3672_v26  ;;  %v3673_v32 = vmax.f32 %v3641_v28, 0.0  ;;  %v6152_v29 = vpop.f32.mrb[49].mxu1  ;;  %v4708_v60 = vpop.f32.mrb[24].mxu0 }
 0x343   : > { %3707 = vst.msk [vmem:[%s6098_s9 + $0x58] sm:$0xff] %vm226_vm0, %v3675_v1  ;;  %v4742_v33 = vadd.f32 %v4708_v60, %v6072_v57  ;;  %v6157_v6 = vpop.f32.mrb[50].mxu1  ;;  %v3515_v14 = vpop.f32.mrb[25].mxu0 }
 0x344   : > { %3705 = vst.msk [vmem:[%s6098_s9 + $0x48] sm:$0xff] %vm226_vm0, %v3673_v32  ;;  %v4743_v48 = vadd.f32 %v3515_v14, %v6074_v58  ;;  %v6162_v49 = vpop.f32.mrb[51].mxu1  ;;  %v4709_v2 = vpop.f32.mrb[26].mxu0 }
 0x345   : > { %v3646_v12 = vadd.f32 %v4742_v33, %v6087_v11  ;;  %v4744_v16 = vadd.f32 %v4709_v2, %v6076_v63  ;;  %v3518_v27 = vpop.f32.mrb[27].mxu0 }
 0x346   : > { %v3644_v57 = vadd.f32 %v4743_v48, %v6087_v11  ;;  %v4745_v13 = vadd.f32 %v3518_v27, %v6078_v51 }
 0x347   : > { %v3678_v34 = vmax.f32 %v3646_v12, 0.0  ;;  %v3647_v61 = vadd.f32 %v4744_v16, %v6087_v11 }
 0x348   : > { %v3676_v4 = vmax.f32 %v3644_v57, 0.0  ;;  %v3645_v58 = vadd.f32 %v4745_v13, %v6087_v11 }
 0x349   : > { %3710 = vst.msk [vmem:[%s6098_s9 + $0x70] sm:$0xff] %vm226_vm0, %v3678_v34  ;;  %v3679_v45 = vmax.f32 %v3647_v61, 0.0 }
 0x34a   : > { %3708 = vst.msk [vmem:[%s6098_s9 + $0x60] sm:$0xff] %vm226_vm0, %v3676_v4  ;;  %v3677_v20 = vmax.f32 %v3645_v58, 0.0  ;;  %v4712_v62 = vpop.f32.mrb[28].mxu0 }
 0x34b   : > { %3711 = vst.msk [vmem:[%s6098_s9 + $0x78] sm:$0xff] %vm226_vm0, %v3679_v45  ;;  %v4746_v63 = vadd.f32 %v4712_v62, %v6080_v0  ;;  %v3531_v51 = vpop.f32.mrb[29].mxu0 }
 0x34c   : > { %3709 = vst.msk [vmem:[%s6098_s9 + $0x68] sm:$0xff] %vm226_vm0, %v3677_v20  ;;  %v4747_v40 = vadd.f32 %v3531_v51, %v6082_v5  ;;  %v4713_v56 = vpop.f32.mrb[30].mxu0 }
 0x34d   : > { %v3650_v44 = vadd.f32 %v4746_v63, %v6087_v11  ;;  %v4748_v54 = vadd.f32 %v4713_v56, %v6090_v10  ;;  %v3534_v59 = vpop.f32.mrb[31].mxu0 }
 0x34e   : > { %v3648_v37 = vadd.f32 %v4747_v40, %v6087_v11  ;;  %v4749_v38 = vadd.f32 %v3534_v59, %v6092_v31 }
 0x34f   : > { %v3682_v30 = vmax.f32 %v3650_v44, 0.0  ;;  %v3651_v0 = vadd.f32 %v4748_v54, %v6087_v11 }
 0x350   : > { %v3680_v35 = vmax.f32 %v3648_v37, 0.0  ;;  %v3649_v39 = vadd.f32 %v4749_v38, %v6087_v11 }
 0x351   : > { %3714 = vst.msk [vmem:[%s6098_s9 + $0x90] sm:$0xff] %vm226_vm0, %v3682_v30  ;;  %v3683_v5 = vmax.f32 %v3651_v0, 0.0 }
 0x352   : > { %3712 = vst.msk [vmem:[%s6098_s9 + $0x80] sm:$0xff] %vm226_vm0, %v3680_v35  ;;  %v3681_v41 = vmax.f32 %v3649_v39, 0.0  ;;  %v4716_v46 = vpop.f32.mrb[32].mxu0 }
 0x353   : > { %3715 = vst.msk [vmem:[%s6098_s9 + $0x98] sm:$0xff] %vm226_vm0, %v3683_v5  ;;  %v4750_v10 = vadd.f32 %v4716_v46, %v6105_v36  ;;  %v3547_v31 = vpop.f32.mrb[33].mxu0 }
 0x354   : > { %3713 = vst.msk [vmem:[%s6098_s9 + $0x88] sm:$0xff] %vm226_vm0, %v3681_v41  ;;  %v4751_v50 = vadd.f32 %v3547_v31, %v6109_v53  ;;  %v4717_v52 = vpop.f32.mrb[34].mxu0 }
 0x355   : > { %v3654_v7 = vadd.f32 %v4750_v10, %v6087_v11  ;;  %v4752_v8 = vadd.f32 %v4717_v52, %v6113_v42  ;;  %v3550_v15 = vpop.f32.mrb[35].mxu0 }
 0x356   : > { %v3652_v17 = vadd.f32 %v4751_v50, %v6087_v11  ;;  %v4753_v19 = vadd.f32 %v3550_v15, %v6117_v3 }
 0x357   : > { %v3686_v21 = vmax.f32 %v3654_v7, 0.0  ;;  %v3655_v36 = vadd.f32 %v4752_v8, %v6087_v11 }
 0x358   : > { %v3684_v22 = vmax.f32 %v3652_v17, 0.0  ;;  %v3653_v23 = vadd.f32 %v4753_v19, %v6087_v11 }
 0x359   : > { %3718 = vst.msk [vmem:[%s6098_s9 + $0xb0] sm:$0xff] %vm226_vm0, %v3686_v21  ;;  %v3687_v53 = vmax.f32 %v3655_v36, 0.0 }
 0x35a   : > { %3716 = vst.msk [vmem:[%s6098_s9 + $0xa0] sm:$0xff] %vm226_vm0, %v3684_v22  ;;  %v3685_v24 = vmax.f32 %v3653_v23, 0.0  ;;  %v4720_v25 = vpop.f32.mrb[36].mxu0 }
 0x35b   : > { %3719 = vst.msk [vmem:[%s6098_s9 + $0xb8] sm:$0xff] %vm226_vm0, %v3687_v53  ;;  %v4754_v42 = vadd.f32 %v4720_v25, %v6125_v43  ;;  %v3563_v3 = vpop.f32.mrb[37].mxu0 }
 0x35c   : > { %3717 = vst.msk [vmem:[%s6098_s9 + $0xa8] sm:$0xff] %vm226_vm0, %v3685_v24  ;;  %v4755_v26 = vadd.f32 %v3563_v3, %v6129_v47  ;;  %v4721_v28 = vpop.f32.mrb[38].mxu0 }
 0x35d   : > { %v3658_v1 = vadd.f32 %v4754_v42, %v6087_v11  ;;  %v4756_v32 = vadd.f32 %v4721_v28, %v6133_v55  ;;  %v3566_v60 = vpop.f32.mrb[39].mxu0 }
 0x35e   : > { %v3656_v33 = vadd.f32 %v4755_v26, %v6087_v11  ;;  %v4757_v14 = vadd.f32 %v3566_v60, %v6138_v9 }
 0x35f   : > { %v3690_v48 = vmax.f32 %v3658_v1, 0.0  ;;  %v3659_v43 = vadd.f32 %v4756_v32, %v6087_v11 }
 0x360   : > { %v3688_v2 = vmax.f32 %v3656_v33, 0.0  ;;  %v3657_v12 = vadd.f32 %v4757_v14, %v6087_v11 }
 0x361   : > { %3722 = vst.msk [vmem:[%s6098_s9 + $0xd0] sm:$0xff] %vm226_vm0, %v3690_v48  ;;  %v3691_v47 = vmax.f32 %v3659_v43, 0.0 }
 0x362   : > { %3720 = vst.msk [vmem:[%s6098_s9 + $0xc0] sm:$0xff] %vm226_vm0, %v3688_v2  ;;  %v3689_v16 = vmax.f32 %v3657_v12, 0.0  ;;  %v4724_v27 = vpop.f32.mrb[40].mxu0 }
 0x363   : > { %3723 = vst.msk [vmem:[%s6098_s9 + $0xd8] sm:$0xff] %vm226_vm0, %v3691_v47  ;;  %v4758_v55 = vadd.f32 %v4724_v27, %v6148_v18  ;;  %v3579_v9 = vpop.f32.mrb[41].mxu0 }
 0x364   : > { %3721 = vst.msk [vmem:[%s6098_s9 + $0xc8] sm:$0xff] %vm226_vm0, %v3689_v16  ;;  %v4759_v57 = vadd.f32 %v3579_v9, %v6152_v29  ;;  %v4725_v13 = vpop.f32.mrb[42].mxu0 }
 0x365   : > { %v3662_v34 = vadd.f32 %v4758_v55, %v6087_v11  ;;  %v4760_v61 = vadd.f32 %v4725_v13, %v6157_v6  ;;  %v3582_v4 = vpop.f32.mrb[43].mxu0 }
 0x366   : > { %v3660_v58 = vadd.f32 %v4759_v57, %v6087_v11  ;;  %v4761_v45 = vadd.f32 %v3582_v4, %v6162_v49 }
 0x367   : > { %v3694_v20 = vmax.f32 %v3662_v34, 0.0  ;;  %v3663_v18 = vadd.f32 %v4760_v61, %v6087_v11 }
 0x368   : > { %v3692_v62 = vmax.f32 %v3660_v58, 0.0  ;;  %v3661_v63 = vadd.f32 %v4761_v45, %v6087_v11 }
 0x369   : > { %3726 = vst.msk [vmem:[%s6098_s9 + $0xf0] sm:$0xff] %vm226_vm0, %v3694_v20  ;;  %v3695_v29 = vmax.f32 %v3663_v18, 0.0 }
 0x36a   : > { %3724 = vst.msk [vmem:[%s6098_s9 + $0xe0] sm:$0xff] %vm226_vm0, %v3692_v62  ;;  %v3693_v51 = vmax.f32 %v3661_v63, 0.0 }
 0x36b   : > { %3727 = vst.msk [vmem:[%s6098_s9 + $0xf8] sm:$0xff] %vm226_vm0, %v3695_v29 }
 0x36c   : > { %3725 = vst.msk [vmem:[%s6098_s9 + $0xe8] sm:$0xff] %vm226_vm0, %v3693_v51 }
 0x36d PF: > { %s15_s18 = sadd.s32 1, %s5077_s18  }
 0x36e   : > { %p12_p4 = scmp.ge.s32.totalorder %s15_s18, 4  }
 0x370   :  { %14 = sbr.rel (!%p12_p4) target bundleno = 1 (0x1), region = 95 }

</bundles_post_ra>
